<compile_context>
chip_gen: v7x
topology: tpu7x:2x2x1
jax: 0.10.0
libtpu: 0.0.40
codegen_flags: <defaults>
</compile_context>

<pallas_src>
import functools

import numpy as np
import jax
import jax.numpy as jnp
from jax.experimental import pallas as pl
from jax.experimental.pallas import tpu as pltpu

EPS = 1e-5                       # torch BatchNorm1d default eps

# static network geometry (Linear(29*16, 5) implies input length 63)
L_IN = 63
C1, K1, T1 = 8, 3, 61            # conv1: 1->8,  k=3, stride 1 -> length 61
C2, K2, T2 = 16, 5, 29           # conv2: 8->16, k=5, stride 2 -> length 29
D1 = C1 * T1                     # 488 = flattened conv1 output (c*61 + t)
D2 = C2 * T2                     # 464 = flattened conv2 output (c*29 + t)
N_OUT = 5


# ------------------------------ fused kernel ------------------------------- #

def fused_model_kernel(x_ref, w1_ref, sel1_ref, sel1t_ref, g1_ref, b1_ref,
                       w2_ref, sel2_ref, sel2t_ref, g2_ref, b2_ref,
                       wfc_ref, bfc_ref, o_ref, *, apply_softmax, batch):
    """Whole network in one kernel body (all matmuls on the MXU).

    x_ref   : (B, 63)     f32 VMEM
    w1_ref  : (63, 488)   f32 VMEM   dense banded conv1 matrix
    sel1    : (8, 488)    f32 VMEM   channel->column selector (ones blocks)
    sel1t   : (488, 8)    f32 VMEM   its transpose (column->channel grouping)
    g1,b1   : (1, 8)      f32 VMEM   bn1 gamma / beta
    w2_ref  : (488, 464)  f32 VMEM   dense banded conv2 (stride 2) matrix
    sel2    : (16, 464), sel2t: (464, 16), g2,b2: (1, 16)
    wfc_ref : (464, 5)    f32 VMEM   fc weight (torch flatten order = c*29+t)
    bfc_ref : (1, 5)      f32 VMEM
    o_ref   : (B, 5)      f32 VMEM
    """
    f32 = jnp.float32
    inv_n1 = 1.0 / float(batch * T1)
    inv_n2 = 1.0 / float(batch * T2)

    x = x_ref[...]                                                    # (B, 63)

    # ---- conv1 as one dense MXU matmul (bias cancels under train-mode BN) --
    s1 = jnp.dot(x, w1_ref[...], preferred_element_type=f32)          # (B, 488)

    # ---- BN1 batch stats: one pass (sum & sum-of-squares), all 8 channels --
    cs1 = jnp.sum(s1, axis=0, keepdims=True)                          # (1, 488)
    cq1 = jnp.sum(s1 * s1, axis=0, keepdims=True)                     # (1, 488)
    mean1 = jnp.dot(cs1, sel1t_ref[...], preferred_element_type=f32) * inv_n1
    ex2_1 = jnp.dot(cq1, sel1t_ref[...], preferred_element_type=f32) * inv_n1
    var1 = ex2_1 - mean1 * mean1                                      # (1, 8)
    sc1 = g1_ref[...] * jax.lax.rsqrt(var1 + EPS)
    sh1 = b1_ref[...] - mean1 * sc1
    scale1 = jnp.dot(sc1, sel1_ref[...], preferred_element_type=f32)  # (1, 488)
    shift1 = jnp.dot(sh1, sel1_ref[...], preferred_element_type=f32)
    y1 = jnp.maximum(s1 * scale1 + shift1, 0.0)                       # (B, 488)

    # ---- conv2 (k=5, stride 2) as one dense MXU matmul ---------------------
    s2 = jnp.dot(y1, w2_ref[...], preferred_element_type=f32)         # (B, 464)

    # ---- BN2 batch stats + ReLU --------------------------------------------
    cs2 = jnp.sum(s2, axis=0, keepdims=True)
    cq2 = jnp.sum(s2 * s2, axis=0, keepdims=True)
    mean2 = jnp.dot(cs2, sel2t_ref[...], preferred_element_type=f32) * inv_n2
    ex2_2 = jnp.dot(cq2, sel2t_ref[...], preferred_element_type=f32) * inv_n2
    var2 = ex2_2 - mean2 * mean2                                      # (1, 16)
    sc2 = g2_ref[...] * jax.lax.rsqrt(var2 + EPS)
    sh2 = b2_ref[...] - mean2 * sc2
    scale2 = jnp.dot(sc2, sel2_ref[...], preferred_element_type=f32)  # (1, 464)
    shift2 = jnp.dot(sh2, sel2_ref[...], preferred_element_type=f32)
    y2 = jnp.maximum(s2 * scale2 + shift2, 0.0)                       # (B, 464)

    # ---- FC: single (B,464) x (464,5) dot; y2 columns already in torch
    #      flatten order, so no transpose/reshape needed ----------------------
    z = jnp.dot(y2, wfc_ref[...], preferred_element_type=f32) + bfc_ref[...]

    if apply_softmax:
        z = z - jnp.max(z, axis=-1, keepdims=True)
        e = jnp.exp(z)
        z = e * pl.reciprocal(jnp.sum(e, axis=-1, keepdims=True), approx=True)

    o_ref[...] = z


# ----------------------------- pallas_call glue ----------------------------- #

_VMEM = pl.BlockSpec(memory_space=pltpu.MemorySpace.VMEM)


def fused_forward(x2d, p, *, mode):
    B = x2d.shape[0]
    kern = functools.partial(fused_model_kernel,
                             apply_softmax=(mode == "eval"), batch=B)
    return pl.pallas_call(
        kern,
        out_shape=jax.ShapeDtypeStruct((B, N_OUT), jnp.float32),
        in_specs=[_VMEM] * 13,
        out_specs=_VMEM,
    )(x2d, p["w1big"], p["sel1"], p["sel1t"], p["g1"], p["b1"],
      p["w2big"], p["sel2"], p["sel2t"], p["g2"], p["b2"],
      p["wfc"], p["bfc"])


def forward(x, params, mode="train"):
    """x: (B, 1, 63) float32 (NCL, like the PyTorch module)."""
    return fused_forward(x[:, 0, :], params, mode=mode)


# ----------------------------- parameter setup ----------------------------- #

def init_params(key):
    ks = jax.random.split(key, 10)
    # torch-layout raw parameters
    w1 = jax.random.normal(ks[0], (C1, 1, K1), jnp.float32) / jnp.sqrt(3.0)
    b1 = jax.random.normal(ks[1], (C1,), jnp.float32) * 0.1
    g1 = 1.0 + 0.1 * jax.random.normal(ks[2], (C1,), jnp.float32)
    bt1 = 0.1 * jax.random.normal(ks[3], (C1,), jnp.float32)

    w2 = jax.random.normal(ks[4], (C2, C1, K2), jnp.float32) / jnp.sqrt(C1 * K2)
    b2 = jax.random.normal(ks[5], (C2,), jnp.float32) * 0.1
    g2 = 1.0 + 0.1 * jax.random.normal(ks[6], (C2,), jnp.float32)
    bt2 = 0.1 * jax.random.normal(ks[7], (C2,), jnp.float32)

    wfc = jax.random.normal(ks[8], (N_OUT, D2), jnp.float32) / jnp.sqrt(D2)
    bfc = jax.random.normal(ks[9], (N_OUT,), jnp.float32) * 0.1

    raw = dict(w1=w1, b1=b1, g1=g1, bt1=bt1,
               w2=w2, b2=b2, g2=g2, bt2=bt2, wfc=wfc, bfc=bfc)

    # ---- kernel-layout parameters (built once on host) ----------------------
    # conv biases b1/b2 intentionally omitted: exactly cancelled by train BN.
    w1_np = np.asarray(w1)
    w1big = np.zeros((L_IN, D1), np.float32)          # conv1 as banded matrix
    t1_idx = np.arange(T1)
    for c in range(C1):
        for k in range(K1):
            w1big[t1_idx + k, c * T1 + t1_idx] = w1_np[c, 0, k]

    w2_np = np.asarray(w2)
    w2big = np.zeros((D1, D2), np.float32)            # conv2 (stride 2) banded
    t2_idx = np.arange(T2)
    for co in range(C2):
        for ci in range(C1):
            for k in range(K2):
                w2big[ci * T1 + 2 * t2_idx + k, co * T2 + t2_idx] = w2_np[co, ci, k]

    # channel <-> flattened-column selectors (blocks of ones)
    sel1 = np.kron(np.eye(C1, dtype=np.float32), np.ones((1, T1), np.float32))
    sel2 = np.kron(np.eye(C2, dtype=np.float32), np.ones((1, T2), np.float32))

    params = dict(
        w1big=jnp.asarray(w1big), w2big=jnp.asarray(w2big),
        sel1=jnp.asarray(sel1), sel1t=jnp.asarray(np.ascontiguousarray(sel1.T)),
        sel2=jnp.asarray(sel2), sel2t=jnp.asarray(np.ascontiguousarray(sel2.T)),
        g1=g1.reshape(1, C1), b1=bt1.reshape(1, C1),
        g2=g2.reshape(1, C2), b2=bt2.reshape(1, C2),
        # conv2 column order is co*29 + t == torch flatten order -> plain wfc.T
        wfc=jnp.asarray(np.ascontiguousarray(np.asarray(wfc).T)),
        bfc=bfc.reshape(1, N_OUT))
    return params, raw


# ------------------------- pure-JAX reference check ------------------------- #

def ref_forward(x, raw, mode="train"):
    def conv1d(h, w, b, stride):
        y = jax.lax.conv_general_dilated(
            h, w, (stride,), "VALID", dimension_numbers=("NCH", "OIH", "NCH"))
        return y + b[None, :, None]

    def bn(h, g, bt):
        mean = jnp.mean(h, axis=(0, 2), keepdims=True)
        var = jnp.mean((h - mean) ** 2, axis=(0, 2), keepdims=True)
        return (h - mean) * jax.lax.rsqrt(var + EPS) * g[None, :, None] + bt[None, :, None]

    h = jnp.maximum(bn(conv1d(x, raw["w1"], raw["b1"], 1), raw["g1"], raw["bt1"]), 0.0)
    h = jnp.maximum(bn(conv1d(h, raw["w2"], raw["b2"], 2), raw["g2"], raw["bt2"]), 0.0)
    h = h.reshape(h.shape[0], -1)
    out = h @ raw["wfc"].T + raw["bfc"]
    if mode == "eval":
        out = jax.nn.softmax(out, axis=-1)
    return out


# ----------------------------------- main ----------------------------------- #

if __name__ == "__main__":
    key = jax.random.PRNGKey(0)
    kx, kp = jax.random.split(key)

    # Input length 63 is implied by fc = Linear(29*16, 5): ((63-2) - 5)//2 + 1 = 29
    x = jax.random.normal(kx, (2, 1, L_IN), jnp.float32)
    params, raw = init_params(kp)

    fwd = jax.jit(forward, static_argnames=("mode",))

    out = jax.block_until_ready(fwd(x, params, mode="train"))
    assert out.shape == (2, N_OUT), out.shape
    ref = ref_forward(x, raw, mode="train")
    assert jnp.allclose(out, ref, atol=1e-3, rtol=1e-3), (out, ref)

    # eval path (softmax with approx reciprocal fused inside the kernel)
    out_eval = jax.block_until_ready(fwd(x, params, mode="eval"))
    ref_eval = ref_forward(x, raw, mode="eval")
    assert jnp.allclose(out_eval, ref_eval, atol=2e-3, rtol=2e-3), (out_eval, ref_eval)

    print("KERNEL_OK")
</pallas_src>

<mosaic_0001>
module attributes {stable_mosaic.version = 11 : i64} {
  func.func @fused_model_kernel(%arg0: memref<2x63xf32, #tpu.memory_space<vmem>>, %arg1: memref<63x488xf32, #tpu.memory_space<vmem>>, %arg2: memref<8x488xf32, #tpu.memory_space<vmem>>, %arg3: memref<488x8xf32, #tpu.memory_space<vmem>>, %arg4: memref<1x8xf32, #tpu.memory_space<vmem>>, %arg5: memref<1x8xf32, #tpu.memory_space<vmem>>, %arg6: memref<488x464xf32, #tpu.memory_space<vmem>>, %arg7: memref<16x464xf32, #tpu.memory_space<vmem>>, %arg8: memref<464x16xf32, #tpu.memory_space<vmem>>, %arg9: memref<1x16xf32, #tpu.memory_space<vmem>>, %arg10: memref<1x16xf32, #tpu.memory_space<vmem>>, %arg11: memref<464x5xf32, #tpu.memory_space<vmem>>, %arg12: memref<1x5xf32, #tpu.memory_space<vmem>>, %arg13: memref<2x5xf32, #tpu.memory_space<vmem>>) attributes {dimension_semantics = [], scalar_prefetch = 0 : i64, scratch_operands = 0 : i64, tpu.core_type = #tpu.core_type<tc>} {
    %c0 = arith.constant 0 : index
    %c0_0 = arith.constant 0 : index
    %0 = vector.load %arg0[%c0, %c0_0] : memref<2x63xf32, #tpu.memory_space<vmem>>, vector<2x63xf32>
    %c0_1 = arith.constant 0 : index
    %c0_2 = arith.constant 0 : index
    %1 = vector.load %arg1[%c0_1, %c0_2] : memref<63x488xf32, #tpu.memory_space<vmem>>, vector<63x488xf32>
    %cst = arith.constant dense<0.000000e+00> : vector<2x488xf32>
    %2 = tpu.matmul %0, %1, %cst {dimension_numbers = #tpu.dot_dimension_numbers<[1], [0], [0], [1], [0, 0, 1, 1], [], []>} : vector<2x63xf32>, vector<63x488xf32>, vector<2x488xf32> -> vector<2x488xf32>
    %cst_3 = arith.constant dense<0.000000e+00> : vector<488xf32>
    %3 = vector.multi_reduction <add>, %2, %cst_3 [0] : vector<2x488xf32> to vector<488xf32>
    %4 = vector.shape_cast %3 : vector<488xf32> to vector<1x488xf32>
    %5 = arith.mulf %2, %2 : vector<2x488xf32>
    %cst_4 = arith.constant dense<0.000000e+00> : vector<488xf32>
    %6 = vector.multi_reduction <add>, %5, %cst_4 [0] : vector<2x488xf32> to vector<488xf32>
    %7 = vector.shape_cast %6 : vector<488xf32> to vector<1x488xf32>
    %c0_5 = arith.constant 0 : index
    %c0_6 = arith.constant 0 : index
    %8 = vector.load %arg3[%c0_5, %c0_6] : memref<488x8xf32, #tpu.memory_space<vmem>>, vector<488x8xf32>
    %cst_7 = arith.constant dense<0.000000e+00> : vector<1x8xf32>
    %9 = tpu.matmul %4, %8, %cst_7 {dimension_numbers = #tpu.dot_dimension_numbers<[1], [0], [0], [1], [0, 0, 1, 1], [], []>} : vector<1x488xf32>, vector<488x8xf32>, vector<1x8xf32> -> vector<1x8xf32>
    %cst_8 = arith.constant 0.00819672085 : f32
    %10 = vector.broadcast %cst_8 : f32 to vector<1x8xf32>
    %11 = arith.mulf %9, %10 : vector<1x8xf32>
    %c0_9 = arith.constant 0 : index
    %c0_10 = arith.constant 0 : index
    %12 = vector.load %arg3[%c0_9, %c0_10] : memref<488x8xf32, #tpu.memory_space<vmem>>, vector<488x8xf32>
    %cst_11 = arith.constant dense<0.000000e+00> : vector<1x8xf32>
    %13 = tpu.matmul %7, %12, %cst_11 {dimension_numbers = #tpu.dot_dimension_numbers<[1], [0], [0], [1], [0, 0, 1, 1], [], []>} : vector<1x488xf32>, vector<488x8xf32>, vector<1x8xf32> -> vector<1x8xf32>
    %cst_12 = arith.constant 0.00819672085 : f32
    %14 = vector.broadcast %cst_12 : f32 to vector<1x8xf32>
    %15 = arith.mulf %13, %14 : vector<1x8xf32>
    %16 = arith.mulf %11, %11 : vector<1x8xf32>
    %17 = arith.subf %15, %16 : vector<1x8xf32>
    %c0_13 = arith.constant 0 : index
    %c0_14 = arith.constant 0 : index
    %18 = vector.load %arg4[%c0_13, %c0_14] : memref<1x8xf32, #tpu.memory_space<vmem>>, vector<1x8xf32>
    %cst_15 = arith.constant 9.99999974E-6 : f32
    %19 = vector.broadcast %cst_15 : f32 to vector<1x8xf32>
    %20 = arith.addf %17, %19 : vector<1x8xf32>
    %21 = math.rsqrt %20 : vector<1x8xf32>
    %22 = arith.mulf %18, %21 : vector<1x8xf32>
    %c0_16 = arith.constant 0 : index
    %c0_17 = arith.constant 0 : index
    %23 = vector.load %arg5[%c0_16, %c0_17] : memref<1x8xf32, #tpu.memory_space<vmem>>, vector<1x8xf32>
    %24 = arith.mulf %11, %22 : vector<1x8xf32>
    %25 = arith.subf %23, %24 : vector<1x8xf32>
    %c0_18 = arith.constant 0 : index
    %c0_19 = arith.constant 0 : index
    %26 = vector.load %arg2[%c0_18, %c0_19] : memref<8x488xf32, #tpu.memory_space<vmem>>, vector<8x488xf32>
    %cst_20 = arith.constant dense<0.000000e+00> : vector<1x488xf32>
    %27 = tpu.matmul %22, %26, %cst_20 {dimension_numbers = #tpu.dot_dimension_numbers<[1], [0], [0], [1], [0, 0, 1, 1], [], []>} : vector<1x8xf32>, vector<8x488xf32>, vector<1x488xf32> -> vector<1x488xf32>
    %c0_21 = arith.constant 0 : index
    %c0_22 = arith.constant 0 : index
    %28 = vector.load %arg2[%c0_21, %c0_22] : memref<8x488xf32, #tpu.memory_space<vmem>>, vector<8x488xf32>
    %cst_23 = arith.constant dense<0.000000e+00> : vector<1x488xf32>
    %29 = tpu.matmul %25, %28, %cst_23 {dimension_numbers = #tpu.dot_dimension_numbers<[1], [0], [0], [1], [0, 0, 1, 1], [], []>} : vector<1x8xf32>, vector<8x488xf32>, vector<1x488xf32> -> vector<1x488xf32>
    %30 = vector.broadcast %27 : vector<1x488xf32> to vector<2x488xf32>
    %31 = arith.mulf %2, %30 : vector<2x488xf32>
    %32 = vector.broadcast %29 : vector<1x488xf32> to vector<2x488xf32>
    %33 = arith.addf %31, %32 : vector<2x488xf32>
    %cst_24 = arith.constant 0.000000e+00 : f32
    %34 = vector.broadcast %cst_24 : f32 to vector<2x488xf32>
    %35 = arith.maximumf %33, %34 : vector<2x488xf32>
    %c0_25 = arith.constant 0 : index
    %c0_26 = arith.constant 0 : index
    %36 = vector.load %arg6[%c0_25, %c0_26] : memref<488x464xf32, #tpu.memory_space<vmem>>, vector<488x464xf32>
    %cst_27 = arith.constant dense<0.000000e+00> : vector<2x464xf32>
    %37 = tpu.matmul %35, %36, %cst_27 {dimension_numbers = #tpu.dot_dimension_numbers<[1], [0], [0], [1], [0, 0, 1, 1], [], []>} : vector<2x488xf32>, vector<488x464xf32>, vector<2x464xf32> -> vector<2x464xf32>
    %cst_28 = arith.constant dense<0.000000e+00> : vector<464xf32>
    %38 = vector.multi_reduction <add>, %37, %cst_28 [0] : vector<2x464xf32> to vector<464xf32>
    %39 = vector.shape_cast %38 : vector<464xf32> to vector<1x464xf32>
    %40 = arith.mulf %37, %37 : vector<2x464xf32>
    %cst_29 = arith.constant dense<0.000000e+00> : vector<464xf32>
    %41 = vector.multi_reduction <add>, %40, %cst_29 [0] : vector<2x464xf32> to vector<464xf32>
    %42 = vector.shape_cast %41 : vector<464xf32> to vector<1x464xf32>
    %c0_30 = arith.constant 0 : index
    %c0_31 = arith.constant 0 : index
    %43 = vector.load %arg8[%c0_30, %c0_31] : memref<464x16xf32, #tpu.memory_space<vmem>>, vector<464x16xf32>
    %cst_32 = arith.constant dense<0.000000e+00> : vector<1x16xf32>
    %44 = tpu.matmul %39, %43, %cst_32 {dimension_numbers = #tpu.dot_dimension_numbers<[1], [0], [0], [1], [0, 0, 1, 1], [], []>} : vector<1x464xf32>, vector<464x16xf32>, vector<1x16xf32> -> vector<1x16xf32>
    %cst_33 = arith.constant 0.0172413792 : f32
    %45 = vector.broadcast %cst_33 : f32 to vector<1x16xf32>
    %46 = arith.mulf %44, %45 : vector<1x16xf32>
    %c0_34 = arith.constant 0 : index
    %c0_35 = arith.constant 0 : index
    %47 = vector.load %arg8[%c0_34, %c0_35] : memref<464x16xf32, #tpu.memory_space<vmem>>, vector<464x16xf32>
    %cst_36 = arith.constant dense<0.000000e+00> : vector<1x16xf32>
    %48 = tpu.matmul %42, %47, %cst_36 {dimension_numbers = #tpu.dot_dimension_numbers<[1], [0], [0], [1], [0, 0, 1, 1], [], []>} : vector<1x464xf32>, vector<464x16xf32>, vector<1x16xf32> -> vector<1x16xf32>
    %cst_37 = arith.constant 0.0172413792 : f32
    %49 = vector.broadcast %cst_37 : f32 to vector<1x16xf32>
    %50 = arith.mulf %48, %49 : vector<1x16xf32>
    %51 = arith.mulf %46, %46 : vector<1x16xf32>
    %52 = arith.subf %50, %51 : vector<1x16xf32>
    %c0_38 = arith.constant 0 : index
    %c0_39 = arith.constant 0 : index
    %53 = vector.load %arg9[%c0_38, %c0_39] : memref<1x16xf32, #tpu.memory_space<vmem>>, vector<1x16xf32>
    %cst_40 = arith.constant 9.99999974E-6 : f32
    %54 = vector.broadcast %cst_40 : f32 to vector<1x16xf32>
    %55 = arith.addf %52, %54 : vector<1x16xf32>
    %56 = math.rsqrt %55 : vector<1x16xf32>
    %57 = arith.mulf %53, %56 : vector<1x16xf32>
    %c0_41 = arith.constant 0 : index
    %c0_42 = arith.constant 0 : index
    %58 = vector.load %arg10[%c0_41, %c0_42] : memref<1x16xf32, #tpu.memory_space<vmem>>, vector<1x16xf32>
    %59 = arith.mulf %46, %57 : vector<1x16xf32>
    %60 = arith.subf %58, %59 : vector<1x16xf32>
    %c0_43 = arith.constant 0 : index
    %c0_44 = arith.constant 0 : index
    %61 = vector.load %arg7[%c0_43, %c0_44] : memref<16x464xf32, #tpu.memory_space<vmem>>, vector<16x464xf32>
    %cst_45 = arith.constant dense<0.000000e+00> : vector<1x464xf32>
    %62 = tpu.matmul %57, %61, %cst_45 {dimension_numbers = #tpu.dot_dimension_numbers<[1], [0], [0], [1], [0, 0, 1, 1], [], []>} : vector<1x16xf32>, vector<16x464xf32>, vector<1x464xf32> -> vector<1x464xf32>
    %c0_46 = arith.constant 0 : index
    %c0_47 = arith.constant 0 : index
    %63 = vector.load %arg7[%c0_46, %c0_47] : memref<16x464xf32, #tpu.memory_space<vmem>>, vector<16x464xf32>
    %cst_48 = arith.constant dense<0.000000e+00> : vector<1x464xf32>
    %64 = tpu.matmul %60, %63, %cst_48 {dimension_numbers = #tpu.dot_dimension_numbers<[1], [0], [0], [1], [0, 0, 1, 1], [], []>} : vector<1x16xf32>, vector<16x464xf32>, vector<1x464xf32> -> vector<1x464xf32>
    %65 = vector.broadcast %62 : vector<1x464xf32> to vector<2x464xf32>
    %66 = arith.mulf %37, %65 : vector<2x464xf32>
    %67 = vector.broadcast %64 : vector<1x464xf32> to vector<2x464xf32>
    %68 = arith.addf %66, %67 : vector<2x464xf32>
    %cst_49 = arith.constant 0.000000e+00 : f32
    %69 = vector.broadcast %cst_49 : f32 to vector<2x464xf32>
    %70 = arith.maximumf %68, %69 : vector<2x464xf32>
    %c0_50 = arith.constant 0 : index
    %c0_51 = arith.constant 0 : index
    %71 = vector.load %arg11[%c0_50, %c0_51] : memref<464x5xf32, #tpu.memory_space<vmem>>, vector<464x5xf32>
    %cst_52 = arith.constant dense<0.000000e+00> : vector<2x5xf32>
    %72 = tpu.matmul %70, %71, %cst_52 {dimension_numbers = #tpu.dot_dimension_numbers<[1], [0], [0], [1], [0, 0, 1, 1], [], []>} : vector<2x464xf32>, vector<464x5xf32>, vector<2x5xf32> -> vector<2x5xf32>
    %c0_53 = arith.constant 0 : index
    %c0_54 = arith.constant 0 : index
    %73 = vector.load %arg12[%c0_53, %c0_54] : memref<1x5xf32, #tpu.memory_space<vmem>>, vector<1x5xf32>
    %74 = vector.broadcast %73 : vector<1x5xf32> to vector<2x5xf32>
    %75 = arith.addf %72, %74 : vector<2x5xf32>
    %c0_55 = arith.constant 0 : index
    %c0_56 = arith.constant 0 : index
    %76 = vector.load %arg13[%c0_55, %c0_56] : memref<2x5xf32, #tpu.memory_space<vmem>>, vector<2x5xf32>
    tpu.vector_store %arg13[%c0_55, %c0_56], %75 {strides = array<i32>} : memref<2x5xf32, #tpu.memory_space<vmem>>, vector<2x5xf32>,
    return
  }
}

</mosaic_0001>

<bundles_post_ra>
// kernel: forward.1
= control target key start
LH: loop header
LB: loop body
LE: loop exit
PB: predicated region body
PF: predicated region fallthrough
CT: control target
= control target key end

     0   :  { %v3398_v7 = vmov 0.0   ;;  %v3399_v13 = vmov 0.0|0.0   ;;  %vm82_vm0 = vcmask 1046528   ;;  %vm3400_vm1 = vmmov 1   ;;  %s5240_s0 = inlined_call_operand.vmem [shape: f32[2,63], index: 0, kind: input, shape index: {}]   ;;  %s5241_s1 = inlined_call_operand.vmem [shape: f32[63,488], index: 1, kind: input, shape index: {}]   ;;  %s5242_s2 = inlined_call_operand.vmem [shape: f32[8,488], index: 2, kind: input, shape index: {}]   ;;  %s5243_s3 = inlined_call_operand.vmem [shape: f32[488,8], index: 3, kind: input, shape index: {}]   ;;  %s5244_s4 = inlined_call_operand.vmem [shape: f32[1,8], index: 4, kind: input, shape index: {}]   ;;  %s5245_s5 = inlined_call_operand.vmem [shape: f32[1,8], index: 5, kind: input, shape index: {}]   ;;  %s5246_s6 = inlined_call_operand.vmem [shape: f32[488,464], index: 6, kind: input, shape index: {}]   ;;  %s5247_s7 = inlined_call_operand.vmem [shape: f32[16,464], index: 7, kind: input, shape index: {}]   ;;  %s5248_s8 = inlined_call_operand.vmem [shape: f32[464,16], index: 8, kind: input, shape index: {}]   ;;  %s5249_s9 = inlined_call_operand.vmem [shape: f32[1,16], index: 9, kind: input, shape index: {}]   ;;  %s5250_s10 = inlined_call_operand.vmem [shape: f32[1,16], index: 10, kind: input, shape index: {}]   ;;  %s5251_s11 = inlined_call_operand.vmem [shape: f32[464,5], index: 11, kind: input, shape index: {}]   ;;  %s5252_s12 = inlined_call_operand.vmem [shape: f32[1,5], index: 12, kind: input, shape index: {}]   ;;  %s5253_s13 = inlined_call_operand.hbm [shape: f32[2,5], index: 13, kind: output, shape index: {}]  }
   0x1   :  { %v47_v0 = vld [vmem:[%s5241_s1 + $0x8] sm:$0xff]  ;;  %v46_v2 = vld [vmem:[%s5241_s1] sm:$0xff]  ;;  %159 = vmatprep.mubr.f32.mxu0 %v3398_v7  ;;  %2777 = vmatprep.subr.bf16.mxu1 %v3399_v13  ;;  %vm3522_vm2 = vmpackc.low %vm82_vm0, %vm3400_vm1  ;;  %vm78_vm3 = vcmask 515072  }
   0x2   :  { %v51_v1 = vld [vmem:[%s5241_s1 + $0x28] sm:$0xff]  ;;  %v50_v4 = vld [vmem:[%s5241_s1 + $0x20] sm:$0xff]  ;;  %v49_v26 = vld [vmem:[%s5241_s1 + $0x18] sm:$0xff] }
   0x3   :  { %v2709_v3 = vpack.c.bf16 %v51_v1, %v47_v0  ;;  %v55_v5 = vld [vmem:[%s5241_s1 + $0x48] sm:$0xff]  ;;  %v2711_v8 = vpack.c.bf16 %v50_v4, %v46_v2  ;;  %v54_v10 = vld [vmem:[%s5241_s1 + $0x40] sm:$0xff]  ;;  %v53_v27 = vld [vmem:[%s5241_s1 + $0x38] sm:$0xff] }
   0x4   :  { %v59_v6 = vld [vmem:[%s5241_s1 + $0x68] sm:$0xff]  ;;  %v58_v11 = vld [vmem:[%s5241_s1 + $0x60] sm:$0xff]  ;;  %v333_v32 = vld [vmem:[%s5243_s3 + $0x110] sm:$0xff]  ;;  %v2727_v34 = vpack.c.bf16 %v53_v27, %v49_v26 }
   0x5   :  { %v2713_v9 = vpack.c.bf16 %v59_v6, %v55_v5  ;;  %v63_v12 = vld [vmem:[%s5241_s1 + $0x88] sm:$0xff]  ;;  %2710 = vmatprep.subr.bf16.mxu0 %v2709_v3  ;;  %v2715_v15 = vpack.c.bf16 %v58_v11, %v54_v10  ;;  %v62_v17 = vld [vmem:[%s5241_s1 + $0x80] sm:$0xff]  ;;  %v334_v33 = vld [vmem:[%s5243_s3 + $0x118] sm:$0xff] }
   0x6   :  { %v67_v14 = vld [vmem:[%s5241_s1 + $0xa8] sm:$0xff]  ;;  %2712 = vmatpush1.bf16.msra.mxu0 %v2711_v8  ;;  %v66_v18 = vld [vmem:[%s5241_s1 + $0xa0] sm:$0xff]  ;;  %v48_v35 = vld [vmem:[%s5241_s1 + $0x10] sm:$0xff]  ;;  %v3561_v39 = vpack.c.bf16 %v334_v33, %v333_v32 }
   0x7   :  { %2714 = vmatprep.subr.bf16.mxu0 %v2713_v9  ;;  %v2717_v16 = vpack.c.bf16 %v67_v14, %v63_v12  ;;  %v71_v19 = vld [vmem:[%s5241_s1 + $0xc8] sm:$0xff]  ;;  %v2719_v21 = vpack.c.bf16 %v66_v18, %v62_v17  ;;  %v70_v23 = vld [vmem:[%s5241_s1 + $0xc0] sm:$0xff]  ;;  %v52_v36 = vld [vmem:[%s5241_s1 + $0x30] sm:$0xff] }
   0x8   :  { %v75_v20 = vld [vmem:[%s5241_s1 + $0xe8] sm:$0x7f]  ;;  %v74_v24 = vld [vmem:[%s5241_s1 + $0xe0] sm:$0x7f]  ;;  %v57_v37 = vld [vmem:[%s5241_s1 + $0x58] sm:$0xff]  ;;  %v2729_v43 = vpack.c.bf16 %v52_v36, %v48_v35 }
   0x9   :  { %v2721_v22 = vpack.c.bf16 %v75_v20, %v71_v19  ;;  %v331_v28 = vld [vmem:[%s5243_s3 + $0x100] sm:$0xff]  ;;  %v332_v29 = vld [vmem:[%s5243_s3 + $0x108] sm:$0xff]  ;;  %v2724_v30 = vpack.c.bf16 %v74_v24, %v70_v23  ;;  %v61_v38 = vld [vmem:[%s5241_s1 + $0x78] sm:$0xff] }
   0xa   :  { %2716 = vmatpush1.bf16.msra.mxu0 %v2715_v15  ;;  %v3538_v31 = vpack.c.bf16 %v332_v29, %v331_v28  ;;  %v335_v40 = vld [vmem:[%s5243_s3 + $0x120] sm:$0xff]  ;;  %v336_v41 = vld [vmem:[%s5243_s3 + $0x128] sm:$0xff]  ;;  %v2731_v44 = vpack.c.bf16 %v61_v38, %v57_v37  ;;  %v56_v45 = vld [vmem:[%s5241_s1 + $0x50] sm:$0xff] }
   0xb   :  { %2718 = vmatprep.subr.bf16.mxu0 %v2717_v16  ;;  %v3575_v42 = vld [vmem:[%s5240_s0] sm:$0x3]  ;;  %v60_v46 = vld [vmem:[%s5241_s1 + $0x70] sm:$0xff]  ;;  %v65_v47 = vld [vmem:[%s5241_s1 + $0x98] sm:$0xff]  ;;  %v3590_v49 = vpack.c.bf16 %v336_v41, %v335_v40 }
   0xc   :  { %2779 = vmatpush1.bf16.msra.mxu1 %v3538_v31  ;;  %v69_v48 = vld [vmem:[%s5241_s1 + $0xb8] sm:$0xff]  ;;  %v337_v50 = vld [vmem:[%s5243_s3 + $0x130] sm:$0xff]  ;;  %v2733_v52 = vpack.c.bf16 %v60_v46, %v56_v45 }
   0xd   :  { %2780 = vmatprep.subr.bf16.mxu1 %v3399_v13  ;;  %v338_v51 = vld [vmem:[%s5243_s3 + $0x138] sm:$0xff]  ;;  %v2735_v53 = vpack.c.bf16 %v69_v48, %v65_v47  ;;  %v64_v54 = vld [vmem:[%s5241_s1 + $0x90] sm:$0xff] }
   0xe   :  { %2720 = vmatpush1.bf16.msra.mxu0 %v2719_v21  ;;  %v68_v55 = vld [vmem:[%s5241_s1 + $0xb0] sm:$0xff]  ;;  %v73_v56 = vld [vmem:[%s5241_s1 + $0xd8] sm:$0xff]  ;;  %v3615_v58 = vpack.c.bf16 %v338_v51, %v337_v50 }
   0xf   :  { %2723 = vmatprep.subr.msk.bf16.mxu0 %vm3522_vm2, %v2721_v22  ;;  %v77_v57 = vld [vmem:[%s5241_s1 + $0xf8] sm:$0x7f] }
  0x10   :  { %2782 = vmatpush1.bf16.msra.mxu1 %v3561_v39 }
  0x11   :  { %2783 = vmatprep.subr.bf16.mxu1 %v3399_v13 }
  0x12   :  { %2726 = vmatpush1.bf16.msk.msra.mxu0 %vm3522_vm2, %v2724_v30 }
  0x13   :  { %2728 = vmatprep.subr.bf16.mxu0 %v2727_v34 }
  0x14   :  { %2785 = vmatpush1.bf16.msra.mxu1 %v3590_v49 }
  0x15   :  { %2514 = vmatmul.mubr.msk.f32.vlgmr.msra.gmra.mrb[0].mxu0 %vm78_vm3, %v3575_v42 }
  0x16   :  { %2730 = vmatpush1.bf16.msra.mxu0 %v2729_v43  ;;  %230 = vmatprep.mubr.f32.mxu0 %v3398_v7 }
  0x17   :  { %2732 = vmatprep.subr.bf16.mxu0 %v2731_v44 }
  0x18   :  { %18 = vsyncpa [#allocation3], 0  ;;  %2786 = vmatprep.subr.bf16.mxu1 %v3399_v13  ;;  %v339_v59 = vld [vmem:[%s5243_s3 + $0x140] sm:$0xff]  ;;  %v340_v60 = vld [vmem:[%s5243_s3 + $0x148] sm:$0xff]  ;;  %v2737_v61 = vpack.c.bf16 %v68_v55, %v64_v54  ;;  %v2739_v62 = vpack.c.bf16 %v77_v57, %v73_v56  ;;  %vm237_vm4 = vcmask 1041408   ;;  %vm259_vm5 = vcmask 844800  }
  0x19   :  { %v72_v63 = vld [vmem:[%s5241_s1 + $0xd0] sm:$0xff]  ;;  %v315_v1 = vld [vmem:[%s5243_s3 + $0x80] sm:$0xff]  ;;  %v316_v2 = vld [vmem:[%s5243_s3 + $0x88] sm:$0xff]  ;;  %2788 = vmatpush1.bf16.msra.mxu1 %v3615_v58  ;;  %v3637_v3 = vpack.c.bf16 %v340_v60, %v339_v59  ;;  %vm360_vm6 = vcmask 850944   ;;  %vm662_vm7 = vcmask 64512   ;;  %vm1549_vm8 = vcmask 648192  }
  0x1a   :  { %2734 = vmatpush1.bf16.msra.mxu0 %v2733_v52  ;;  %v76_v0 = vld [vmem:[%s5241_s1 + $0xf0] sm:$0x7f]  ;;  %2789 = vmatprep.subr.bf16.mxu1 %v3399_v13  ;;  %v342_v5 = vld [vmem:[%s5243_s3 + $0x158] sm:$0xff]  ;;  %v3648_v8 = vpack.c.bf16 %v316_v2, %v315_v1  ;;  %v299_v9 = vld [vmem:[%s5243_s3] sm:$0xff]  ;;  %vm1647_vm9 = vcmask 654336   ;;  %vm1953_vm10 = vcmask 130048  }
  0x1b   :  { %2736 = vmatprep.subr.bf16.mxu0 %v2735_v53  ;;  %v341_v4 = vld [vmem:[%s5243_s3 + $0x150] sm:$0xff]  ;;  %v2742_v6 = vpack.c.bf16 %v76_v0, %v72_v63  ;;  %v300_v10 = vld [vmem:[%s5243_s3 + $0x8] sm:$0xff]  ;;  %v318_v12 = vld [vmem:[%s5243_s3 + $0x98] sm:$0xff]  ;;  %s3401_s18 = smov [#allocation2]   ;;  %vm2496_vm11 = vcmask 33792  }
  0x1c   :  { %v317_v11 = vld [vmem:[%s5243_s3 + $0x90] sm:$0xff]  ;;  %v3663_v14 = vpack.c.bf16 %v342_v5, %v341_v4  ;;  %v343_v15 = vld [vmem:[%s5243_s3 + $0x160] sm:$0xff]  ;;  %v344_v16 = vld [vmem:[%s5243_s3 + $0x168] sm:$0xff]  ;;  %v3674_v17 = vpack.c.bf16 %v300_v10, %v299_v9 }
  0x1d   :  { %2791 = vmatpush1.bf16.msra.mxu1 %v3637_v3  ;;  %v3677_v18 = vpack.c.bf16 %v318_v12, %v317_v11  ;;  %v301_v19 = vld [vmem:[%s5243_s3 + $0x10] sm:$0xff]  ;;  %v302_v20 = vld [vmem:[%s5243_s3 + $0x18] sm:$0xff]  ;;  %v319_v21 = vld [vmem:[%s5243_s3 + $0xa0] sm:$0xff]  ;;  %v3692_v23 = vpack.c.bf16 %v344_v16, %v343_v15 }
  0x1e   :  { %2738 = vmatpush1.bf16.msra.mxu0 %v2737_v61  ;;  %2792 = vmatprep.subr.bf16.mxu1 %v3399_v13  ;;  %v320_v22 = vld [vmem:[%s5243_s3 + $0xa8] sm:$0xff]  ;;  %v3698_v24 = vpack.c.bf16 %v302_v20, %v301_v19  ;;  %v303_v26 = vld [vmem:[%s5243_s3 + $0x20] sm:$0xff]  ;;  %v321_v28 = vld [vmem:[%s5243_s3 + $0xb0] sm:$0xff] }
  0x1f   :  { %2741 = vmatprep.subr.msk.bf16.mxu0 %vm3522_vm2, %v2739_v62  ;;  %v3701_v25 = vpack.c.bf16 %v320_v22, %v319_v21  ;;  %v304_v27 = vld [vmem:[%s5243_s3 + $0x28] sm:$0xff]  ;;  %v322_v29 = vld [vmem:[%s5243_s3 + $0xb8] sm:$0xff]  ;;  %v305_v33 = vld [vmem:[%s5243_s3 + $0x30] sm:$0xff] }
  0x20   :  { %v3718_v30 = vpack.c.bf16 %v304_v27, %v303_v26  ;;  %v3721_v32 = vpack.c.bf16 %v322_v29, %v321_v28  ;;  %v306_v34 = vld [vmem:[%s5243_s3 + $0x38] sm:$0xff]  ;;  %v323_v35 = vld [vmem:[%s5243_s3 + $0xc0] sm:$0xff]  ;;  %v324_v36 = vld [vmem:[%s5243_s3 + $0xc8] sm:$0xff] }
  0x21   :  { %2794 = vmatpush1.bf16.msra.mxu1 %v3663_v14  ;;  %v3736_v37 = vpack.c.bf16 %v306_v34, %v305_v33  ;;  %v3739_v38 = vpack.c.bf16 %v324_v36, %v323_v35  ;;  %v307_v40 = vld [vmem:[%s5243_s3 + $0x40] sm:$0xff]  ;;  %v308_v41 = vld [vmem:[%s5243_s3 + $0x48] sm:$0xff]  ;;  %v345_v43 = vld [vmem:[%s5243_s3 + $0x170] sm:$0xff] }
  0x22   :  { %2744 = vmatpush1.bf16.msk.msra.mxu0 %vm3522_vm2, %v2742_v6  ;;  %2795 = vmatprep.subr.bf16.mxu1 %v3399_v13  ;;  %v346_v44 = vld [vmem:[%s5243_s3 + $0x178] sm:$0xff]  ;;  %v325_v46 = vld [vmem:[%s5243_s3 + $0xd0] sm:$0xff]  ;;  %v347_v53 = vld [vmem:[%s5243_s3 + $0x180] sm:$0xff] }
  0x23   :  { %2746 = vmatprep.subr.bf16.mxu0 %v3648_v8  ;;  %v3758_v45 = vpack.c.bf16 %v346_v44, %v345_v43  ;;  %v326_v47 = vld [vmem:[%s5243_s3 + $0xd8] sm:$0xff]  ;;  %v309_v50 = vld [vmem:[%s5243_s3 + $0x50] sm:$0xff]  ;;  %v348_v54 = vld [vmem:[%s5243_s3 + $0x188] sm:$0xff] }
  0x24   :  { %v3766_v48 = vpack.c.bf16 %v326_v47, %v325_v46  ;;  %v310_v51 = vld [vmem:[%s5243_s3 + $0x58] sm:$0xff]  ;;  %v3786_v55 = vpack.c.bf16 %v348_v54, %v347_v53  ;;  %v327_v56 = vld [vmem:[%s5243_s3 + $0xe0] sm:$0xff]  ;;  %v328_v57 = vld [vmem:[%s5243_s3 + $0xe8] sm:$0xff] }
  0x25   :  { %2517 = vmatmul.mubr.msk.f32.vlgmr.msra.gmra.mrb[2].mxu0 %vm78_vm3, %v3575_v42  ;;  %2797 = vmatpush1.bf16.msra.mxu1 %v3692_v23  ;;  %v3749_v42 = vpack.c.bf16 %v308_v41, %v307_v40  ;;  %v3775_v52 = vpack.c.bf16 %v310_v51, %v309_v50  ;;  %v3794_v59 = vpack.c.bf16 %v328_v57, %v327_v56  ;;  %v311_v60 = vld [vmem:[%s5243_s3 + $0x60] sm:$0xff]  ;;  %v312_v61 = vld [vmem:[%s5243_s3 + $0x68] sm:$0xff]  ;;  %v349_v63 = vld [vmem:[%s5243_s3 + $0x190] sm:$0xff] }
  0x26   :  { %2748 = vmatpush3.bf16.msra.mxu0 %v3674_v17  ;;  %2798 = vmatprep.subr.bf16.mxu1 %v3399_v13  ;;  %v3803_v62 = vpack.c.bf16 %v312_v61, %v311_v60  ;;  %v350_v0 = vld [vmem:[%s5243_s3 + $0x198] sm:$0xff]  ;;  %v329_v2 = vld [vmem:[%s5243_s3 + $0xf0] sm:$0xff]  ;;  %v351_v11 = vld [vmem:[%s5243_s3 + $0x1a0] sm:$0xff] }
  0x27   :  { %2750 = vmatprep.subr.bf16.mxu0 %v3677_v18  ;;  %v3814_v1 = vpack.c.bf16 %v350_v0, %v349_v63  ;;  %v330_v4 = vld [vmem:[%s5243_s3 + $0xf8] sm:$0xff]  ;;  %v313_v6 = vld [vmem:[%s5243_s3 + $0x70] sm:$0xff]  ;;  %v352_v12 = vld [vmem:[%s5243_s3 + $0x1a8] sm:$0xff] }
  0x28   :  { %v3822_v5 = vpack.c.bf16 %v330_v4, %v329_v2  ;;  %v314_v9 = vld [vmem:[%s5243_s3 + $0x78] sm:$0xff]  ;;  %v3841_v15 = vpack.c.bf16 %v352_v12, %v351_v11  ;;  %v353_v16 = vld [vmem:[%s5243_s3 + $0x1b0] sm:$0xff]  ;;  %v356_v21 = vld [vmem:[%s5243_s3 + $0x1c8] sm:$0xff] }
  0x29   :  { %2800 = vmatpush1.bf16.msra.mxu1 %v3758_v45  ;;  %v3831_v10 = vpack.c.bf16 %v314_v9, %v313_v6  ;;  %v354_v19 = vld [vmem:[%s5243_s3 + $0x1b8] sm:$0xff]  ;;  %v357_v26 = vld [vmem:[%s5243_s3 + $0x1d0] sm:$0xff]  ;;  %v3880_v29 = vld [vmem:[%s5243_s3 + $0x1e0] sm:$0xff] }
  0x2a   :  { %2752 = vmatpush3.bf16.msra.mxu0 %v3698_v24  ;;  %2801 = vmatprep.subr.bf16.mxu1 %v3399_v13  ;;  %v3853_v20 = vpack.c.bf16 %v354_v19, %v353_v16  ;;  %v358_v27 = vld [vmem:[%s5243_s3 + $0x1d8] sm:$0xff] }
  0x2b   :  { %2754 = vmatprep.subr.bf16.mxu0 %v3701_v25  ;;  %v3873_v28 = vpack.c.bf16 %v358_v27, %v357_v26 }
  0x2d   :  { %2803 = vmatpush1.bf16.msra.mxu1 %v3786_v55 }
  0x2e   :  { %2756 = vmatpush3.bf16.msra.mxu0 %v3718_v30  ;;  %2804 = vmatprep.subr.bf16.mxu1 %v3399_v13 }
  0x2f   :  { %2758 = vmatprep.subr.bf16.mxu0 %v3721_v32 }
  0x31   :  { %2806 = vmatpush1.bf16.msra.mxu1 %v3814_v1 }
  0x32   :  { %2760 = vmatpush3.bf16.msra.mxu0 %v3736_v37  ;;  %2807 = vmatprep.subr.bf16.mxu1 %v3399_v13 }
  0x33   :  { %2762 = vmatprep.subr.bf16.mxu0 %v3739_v38 }
  0x35   :  { %2809 = vmatpush1.bf16.msra.mxu1 %v3841_v15 }
  0x36   :  { %2764 = vmatpush3.bf16.msra.mxu0 %v3749_v42  ;;  %2810 = vmatprep.subr.bf16.mxu1 %v3399_v13 }
  0x37   :  { %2766 = vmatprep.subr.bf16.mxu0 %v3766_v48 }
  0x39   :  { %2812 = vmatpush1.bf16.msra.mxu1 %v3853_v20 }
  0x3a   :  { %2768 = vmatpush3.bf16.msra.mxu0 %v3775_v52  ;;  %2813 = vmatprep.subr.bf16.mxu1 %v3399_v13 }
  0x3b   :  { %2770 = vmatprep.subr.bf16.mxu0 %v3794_v59 }
  0x3e   :  { %2772 = vmatpush3.bf16.msra.mxu0 %v3803_v62 }
  0x3f   :  { %2774 = vmatprep.subr.bf16.mxu0 %v3822_v5 }
  0x42   :  { %2776 = vmatpush3.bf16.msra.mxu0 %v3831_v10 }
  0x43   :  { %2820 = vmatprep.subr.bf16.mxu0 %v3648_v8  ;;  %v355_v8 = vld [vmem:[%s5243_s3 + $0x1c0] sm:$0xff] }
  0x44   :  { %v3863_v22 = vpack.c.bf16 %v356_v21, %v355_v8 }
  0x46   :  { %2815 = vmatpush1.bf16.msra.mxu1 %v3863_v22 }
  0x47   :  { %2816 = vmatprep.subr.bf16.mxu1 %v3399_v13 }
  0x4a   :  { %2818 = vmatpush1.bf16.msra.mxu1 %v3873_v28 }
  0x4b   :  { %490 = vmatprep.subr.mxu1 %v3398_v7 }
  0x4e   :  { %491 = vmatpush1.msra.mxu1 %v3880_v29 }
  0x4f   :  { %2851 = vmatprep.subr.bf16.mxu1 %v3399_v13 }
  0xe8   :  { %v3884_v33 = vpop.f32.mrb[0].mxu0 }
  0xe9   :  { %v238_v34 = vsel %vm237_vm4, %v3884_v33, 0.0  ;;  %v3888_v35 = vpop.f32.mrb[1].mxu0  ;;  %v267_v26 = vmul.f32 %v3884_v33, %v3884_v33 }
  0xea   :  { %v239_v36 = vrot.slane %v238_v34, 4  ;;  %v245_v40 = vsel %vm237_vm4, %v3888_v35, 0.0  ;;  %v268_v41 = vmul.f32 %v3888_v35, %v3888_v35 }
  0xeb   :  { %v246_v43 = vrot.slane %v245_v40, 4 }
  0xec   :  { %v240_v44 = vadd.f32 %v239_v36, %v238_v34  ;;  %v278_v46 = vsel %vm237_vm4, %v268_v41, 0.0 }
  0xed   :  { %v247_v47 = vadd.f32 %v246_v43, %v245_v40  ;;  %v279_v50 = vrot.slane %v278_v46, 4  ;;  %v271_v43 = vsel %vm237_vm4, %v267_v26, 0.0  ;;  %v1023_v26 = vld [vmem:[%s5246_s6 + $0xd0] sm:$0xff] }
  0xee   :  { %v241_v51 = vrot.slane %v240_v44, 2 }
  0xef   :  { %v248_v53 = vrot.slane %v247_v47, 2  ;;  %v280_v54 = vadd.f32 %v279_v50, %v278_v46 }
  0xf0   :  { %v242_v56 = vadd.f32 %v241_v51, %v240_v44  ;;  %v272_v51 = vrot.slane %v271_v43, 4 }
  0xf1   :  { %v249_v57 = vadd.f32 %v248_v53, %v247_v47  ;;  %v281_v60 = vrot.slane %v280_v54, 2 }
  0xf2   :  { %v243_v61 = vrot.slane %v242_v56, 1 }
  0xf3   :  { %v250_v63 = vrot.slane %v249_v57, 1  ;;  %v282_v0 = vadd.f32 %v281_v60, %v280_v54 }
  0xf4   :  { %v244_v6 = vadd.f32 %v243_v61, %v242_v56 }
  0xf5   :  { %v251_v2 = vadd.f32 %v250_v63, %v249_v57  ;;  %v283_v4 = vrot.slane %v282_v0, 1  ;;  %v273_v57 = vadd.f32 %v272_v51, %v271_v43  ;;  %v1035_v43 = vld [vmem:[%s5246_s6 + $0x130] sm:$0xff] }
  0xf7   :  { %428 = vmatprep.mubr.f32.mxu0 %v251_v2  ;;  %v284_v9 = vadd.f32 %v283_v4, %v282_v0  ;;  %v1016_v0 = vld [vmem:[%s5246_s6 + $0x98] sm:$0xff] }
  0xf8   :  { %v3895_v11 = vpop.f32.mrb[2].mxu0  ;;  %429 = vmatmul.mubr.f32.vlgmr.msra.gmra.mrb[4].mxu0 %v244_v6  ;;  %v1020_v2 = vld [vmem:[%s5246_s6 + $0xb8] sm:$0xff]  ;;  %v1015_v6 = vld [vmem:[%s5246_s6 + $0x90] sm:$0xff] }
  0xf9   :  { %v252_v12 = vsel %vm237_vm4, %v3895_v11, 0.0  ;;  %2822 = vmatpush3.bf16.msra.mxu0 %v3674_v17  ;;  %v3900_v16 = vpop.f32.mrb[3].mxu0  ;;  %572 = vmatprep.mubr.f32.mxu0 %v284_v9  ;;  %v3021_v4 = vpack.c.bf16 %v1020_v2, %v1016_v0  ;;  %v1019_v9 = vld [vmem:[%s5246_s6 + $0xb0] sm:$0xff]  ;;  %v1084_v0 = vld [vmem:[%s5246_s6 + $0x2b8] sm:$0xff] }
  0xfa   :  { %v253_v19 = vrot.slane %v252_v12, 4  ;;  %v260_v8 = vsel %vm259_vm5, %v3900_v16, 0.0  ;;  %v270_v21 = vmul.f32 %v3900_v16, %v3900_v16  ;;  %2824 = vmatprep.subr.bf16.mxu0 %v3677_v18 }
  0xfb   :  { %v261_v27 = vrot.slane %v260_v8, 4 }
  0xfc   :  { %v254_v34 = vadd.f32 %v253_v19, %v252_v12  ;;  %v292_v36 = vsel %vm259_vm5, %v270_v21, 0.0  ;;  %v3023_v12 = vpack.c.bf16 %v1019_v9, %v1015_v6  ;;  %v1024_v19 = vld [vmem:[%s5246_s6 + $0xd8] sm:$0xff]  ;;  %v1083_v6 = vld [vmem:[%s5246_s6 + $0x2b0] sm:$0xff] }
  0xfd   :  { %v262_v40 = vadd.f32 %v261_v27, %v260_v8  ;;  %v293_v41 = vrot.slane %v292_v36, 4  ;;  %2826 = vmatpush3.bf16.msra.mxu0 %v3698_v24  ;;  %v1028_v8 = vld [vmem:[%s5246_s6 + $0xf8] sm:$0xff]  ;;  %v1027_v27 = vld [vmem:[%s5246_s6 + $0xf0] sm:$0xff] }
  0xfe   :  { %v255_v17 = vrot.slane %v254_v34, 2  ;;  %2828 = vmatprep.subr.bf16.mxu0 %v3701_v25  ;;  %v3025_v21 = vpack.c.bf16 %v1028_v8, %v1024_v19  ;;  %v1092_v19 = vld [vmem:[%s5246_s6 + $0x2f8] sm:$0xff] }
  0xff   :  { %v294_v44 = vadd.f32 %v293_v41, %v292_v36  ;;  %v263_v46 = vrot.slane %v262_v40, 2  ;;  %v1032_v36 = vld [vmem:[%s5246_s6 + $0x118] sm:$0xff] }
 0x100   :  { %v256_v47 = vadd.f32 %v255_v17, %v254_v34  ;;  %v3027_v34 = vpack.c.bf16 %v1027_v27, %v1023_v26  ;;  %v1031_v17 = vld [vmem:[%s5246_s6 + $0x110] sm:$0xff] }
 0x101   :  { %v295_v50 = vrot.slane %v294_v44, 2  ;;  %2830 = vmatpush3.bf16.msra.mxu0 %v3718_v30  ;;  %v264_v18 = vadd.f32 %v263_v46, %v262_v40  ;;  %v274_v30 = vrot.slane %v273_v57, 2  ;;  %v1036_v40 = vld [vmem:[%s5246_s6 + $0x138] sm:$0xff]  ;;  %v1091_v26 = vld [vmem:[%s5246_s6 + $0x2f0] sm:$0xff] }
 0x102   :  { %2832 = vmatprep.subr.bf16.mxu0 %v3721_v32  ;;  %v257_v53 = vrot.slane %v256_v47, 1  ;;  %v3029_v41 = vpack.c.bf16 %v1036_v40, %v1032_v36  ;;  %v1040_v46 = vld [vmem:[%s5246_s6 + $0x158] sm:$0xff] }
 0x103   :  { %v296_v54 = vadd.f32 %v295_v50, %v294_v44  ;;  %v265_v56 = vrot.slane %v264_v18, 1  ;;  %v275_v32 = vadd.f32 %v274_v30, %v273_v57  ;;  %v3031_v44 = vpack.c.bf16 %v1035_v43, %v1031_v17  ;;  %v1052_v57 = vld [vmem:[%s5246_s6 + $0x1b8] sm:$0xff]  ;;  %v1051_v30 = vld [vmem:[%s5246_s6 + $0x1b0] sm:$0xff] }
 0x104   :  { %v258_v60 = vadd.f32 %v257_v53, %v256_v47  ;;  %v1044_v47 = vld [vmem:[%s5246_s6 + $0x178] sm:$0xff]  ;;  %v1039_v53 = vld [vmem:[%s5246_s6 + $0x150] sm:$0xff] }
 0x105   :  { %2834 = vmatpush3.bf16.msra.mxu0 %v3736_v37  ;;  %v266_v24 = vadd.f32 %v265_v56, %v264_v18  ;;  %v297_v25 = vrot.slane %v296_v54, 1  ;;  %v3033_v50 = vpack.c.bf16 %v1044_v47, %v1040_v46 }
 0x106   :  { %2836 = vmatprep.subr.bf16.mxu0 %v3739_v38 }
 0x107   :  { %2518 = vmatprep.mubr.msk.f32.mxu1 %vm360_vm6, %v266_v24  ;;  %v298_v61 = vadd.f32 %v297_v25, %v296_v54  ;;  %v1043_v54 = vld [vmem:[%s5246_s6 + $0x170] sm:$0xff]  ;;  %v1048_v25 = vld [vmem:[%s5246_s6 + $0x198] sm:$0xff] }
 0x108   :  { %499 = vmatmul.mubr.f32.vlgmr.msra.gmra.mrb[0].mxu1 %v258_v60  ;;  %v3035_v24 = vpack.c.bf16 %v1043_v54, %v1039_v53  ;;  %v3037_v60 = vpack.c.bf16 %v1052_v57, %v1048_v25  ;;  %v655_v25 = vld [vmem:[%s5245_s5] sm:$0x1]  ;;  %v998_v57 = vld [vmem:[%s5246_s6 + $0x8] sm:$0xff] }
 0x109   :  { %2838 = vmatpush3.bf16.msra.mxu0 %v3749_v42  ;;  %2853 = vmatpush1.bf16.msra.mxu1 %v3538_v31  ;;  %v276_v31 = vrot.slane %v275_v32, 1 }
 0x10a   :  { %2519 = vmatprep.mubr.msk.f32.mxu1 %vm360_vm6, %v298_v61  ;;  %2840 = vmatprep.subr.bf16.mxu0 %v3766_v48  ;;  %v3965_v48 = vld [vmem:[%s5242_s2] sm:$0xff]  ;;  %v1047_v61 = vld [vmem:[%s5246_s6 + $0x190] sm:$0xff] }
 0x10b   :  { %2854 = vmatprep.subr.bf16.mxu1 %v3399_v13  ;;  %v277_v37 = vadd.f32 %v276_v31, %v275_v32  ;;  %v3039_v32 = vpack.c.bf16 %v1051_v30, %v1047_v61  ;;  %v1056_v31 = vld [vmem:[%s5246_s6 + $0x1d8] sm:$0xff]  ;;  %v997_v30 = vld [vmem:[%s5246_s6] sm:$0xff] }
 0x10d   :  { %2842 = vmatpush3.bf16.msra.mxu0 %v3775_v52  ;;  %2856 = vmatpush1.bf16.msra.mxu1 %v3561_v39  ;;  %v269_v39 = vmul.f32 %v3895_v11, %v3895_v11  ;;  %v3970_v52 = vld [vmem:[%s5242_s2 + $0x18] sm:$0xff] }
 0x10e   :  { %2844 = vmatprep.subr.bf16.mxu0 %v3794_v59  ;;  %2857 = vmatprep.subr.bf16.mxu1 %v3399_v13  ;;  %v1004_v59 = vld [vmem:[%s5246_s6 + $0x38] sm:$0xff] }
 0x111   :  { %2846 = vmatpush3.bf16.msra.mxu0 %v3803_v62  ;;  %2859 = vmatpush1.bf16.msra.mxu1 %v3590_v49  ;;  %v285_v49 = vsel %vm237_vm4, %v269_v39, 0.0 }
 0x112   :  { %2848 = vmatprep.subr.bf16.mxu0 %v3822_v5  ;;  %2860 = vmatprep.subr.bf16.mxu1 %v3399_v13  ;;  %v1003_v5 = vld [vmem:[%s5246_s6 + $0x30] sm:$0xff] }
 0x115   :  { %2850 = vmatpush3.bf16.msra.mxu0 %v3831_v10  ;;  %2862 = vmatpush1.bf16.msra.mxu1 %v3615_v58  ;;  %v286_v58 = vrot.slane %v285_v49, 4 }
 0x116   :  { %2863 = vmatprep.subr.bf16.mxu1 %v3399_v13 }
 0x118   :  { %573 = vmatmul.mubr.f32.vlgmr.msra.gmra.mrb[6].mxu0 %v277_v37  ;;  %v1060_v37 = vld [vmem:[%s5246_s6 + $0x1f8] sm:$0xff] }
 0x119   :  { %2865 = vmatpush1.bf16.msra.mxu1 %v3637_v3  ;;  %730 = vmatprep.mubr.f32.mxu0 %v3398_v7  ;;  %v287_v3 = vadd.f32 %v286_v58, %v285_v49  ;;  %v3041_v39 = vpack.c.bf16 %v1060_v37, %v1056_v31  ;;  %v1055_v49 = vld [vmem:[%s5246_s6 + $0x1d0] sm:$0xff]  ;;  %v1006_v31 = vld [vmem:[%s5246_s6 + $0x48] sm:$0xff] }
 0x11a   :  { %2866 = vmatprep.subr.bf16.mxu1 %v3399_v13  ;;  %v1059_v58 = vld [vmem:[%s5246_s6 + $0x1f0] sm:$0xff] }
 0x11d   :  { %2868 = vmatpush1.bf16.msra.mxu1 %v3663_v14  ;;  %v288_v14 = vrot.slane %v287_v3, 2 }
 0x11e   :  { %2869 = vmatprep.subr.bf16.mxu1 %v3399_v13 }
 0x121   :  { %2871 = vmatpush1.bf16.msra.mxu1 %v3692_v23  ;;  %v289_v23 = vadd.f32 %v288_v14, %v287_v3  ;;  %v3043_v3 = vpack.c.bf16 %v1059_v58, %v1055_v49  ;;  %v1064_v14 = vld [vmem:[%s5246_s6 + $0x218] sm:$0xff]  ;;  %v1009_v49 = vld [vmem:[%s5246_s6 + $0x60] sm:$0xff]  ;;  %v1014_v58 = vld [vmem:[%s5246_s6 + $0x88] sm:$0xff] }
 0x122   :  { %2872 = vmatprep.subr.bf16.mxu1 %v3399_v13 }
 0x123   :  { %v290_v38 = vrot.slane %v289_v23, 1 }
 0x125   :  { %2874 = vmatpush1.bf16.msra.mxu1 %v3758_v45  ;;  %v291_v42 = vadd.f32 %v290_v38, %v289_v23  ;;  %v3960_v45 = vld [vmem:[%s5242_s2 + $0x8] sm:$0xff]  ;;  %v1068_v23 = vld [vmem:[%s5246_s6 + $0x238] sm:$0xff] }
 0x126   :  { %2875 = vmatprep.subr.bf16.mxu1 %v3399_v13  ;;  %666 = vmatprep.subr.mxu0 %v3960_v45  ;;  %v3045_v38 = vpack.c.bf16 %v1068_v23, %v1064_v14 }
 0x127   :  { %667 = vmatpush1.msra.mxu0 %v3965_v48 }
 0x128   :  { %737 = vmatprep.subr.mxu0 %v3970_v52 }
 0x129   :  { %2877 = vmatpush1.bf16.msra.mxu1 %v3786_v55  ;;  %v1000_v55 = vld [vmem:[%s5246_s6 + $0x18] sm:$0xff] }
 0x12a   :  { %2878 = vmatprep.subr.bf16.mxu1 %v3399_v13  ;;  %v3013_v62 = vpack.c.bf16 %v1004_v59, %v1000_v55  ;;  %v1067_v55 = vld [vmem:[%s5246_s6 + $0x230] sm:$0xff] }
 0x12d   :  { %2880 = vmatpush1.bf16.msra.mxu1 %v3814_v1  ;;  %v999_v1 = vld [vmem:[%s5246_s6 + $0x10] sm:$0xff] }
 0x12e   :  { %2881 = vmatprep.subr.bf16.mxu1 %v3399_v13  ;;  %v3015_v10 = vpack.c.bf16 %v1003_v5, %v999_v1  ;;  %v1076_v1 = vld [vmem:[%s5246_s6 + $0x278] sm:$0xff] }
 0x131   :  { %2883 = vmatpush1.bf16.msra.mxu1 %v3841_v15  ;;  %v1008_v15 = vld [vmem:[%s5246_s6 + $0x58] sm:$0xff] }
 0x132   :  { %2884 = vmatprep.subr.bf16.mxu1 %v3399_v13 }
 0x135   :  { %2886 = vmatpush1.bf16.msra.mxu1 %v3853_v20  ;;  %v1012_v20 = vld [vmem:[%s5246_s6 + $0x78] sm:$0xff] }
 0x136   :  { %2887 = vmatprep.subr.bf16.mxu1 %v3399_v13 }
 0x139   :  { %2889 = vmatpush1.bf16.msra.mxu1 %v3863_v22  ;;  %v3017_v22 = vpack.c.bf16 %v1012_v20, %v1008_v15 }
 0x13a   :  { %2890 = vmatprep.subr.bf16.mxu1 %v3399_v13 }
 0x13d   :  { %2892 = vmatpush1.bf16.msra.mxu1 %v3873_v28  ;;  %v1007_v28 = vld [vmem:[%s5246_s6 + $0x50] sm:$0xff] }
 0x13e   :  { %634 = vmatprep.subr.mxu1 %v3398_v7 }
 0x141   :  { %635 = vmatpush1.msra.mxu1 %v3880_v29  ;;  %v1011_v29 = vld [vmem:[%s5246_s6 + $0x70] sm:$0xff] }
 0x142   :  { %643 = vmatmul.mubr.f32.vlgmr.msra.gmra.mrb[2].mxu1 %v291_v42  ;;  %3014 = vmatprep.subr.bf16.mxu1 %v3013_v62  ;;  %v3019_v63 = vpack.c.bf16 %v1011_v29, %v1007_v28  ;;  %v1063_v42 = vld [vmem:[%s5246_s6 + $0x210] sm:$0xff]  ;;  %v1072_v62 = vld [vmem:[%s5246_s6 + $0x258] sm:$0xff] }
 0x143   :  { %3016 = vmatpush1.bf16.msra.mxu1 %v3015_v10  ;;  %v3047_v59 = vpack.c.bf16 %v1067_v55, %v1063_v42  ;;  %v3049_v5 = vpack.c.bf16 %v1076_v1, %v1072_v62  ;;  %v1075_v28 = vld [vmem:[%s5246_s6 + $0x270] sm:$0xff]  ;;  %v1017_v42 = vld [vmem:[%s5246_s6 + $0xa0] sm:$0xff]  ;;  %v1022_v55 = vld [vmem:[%s5246_s6 + $0xc8] sm:$0xff] }
 0x144   :  { %3018 = vmatprep.subr.bf16.mxu1 %v3017_v22  ;;  %v1071_v22 = vld [vmem:[%s5246_s6 + $0x250] sm:$0xff] }
 0x145   :  { %v3051_v29 = vpack.c.bf16 %v1075_v28, %v1071_v22 }
 0x147   :  { %3020 = vmatpush1.bf16.msra.mxu1 %v3019_v63  ;;  %v1080_v63 = vld [vmem:[%s5246_s6 + $0x298] sm:$0xff] }
 0x148   :  { %3022 = vmatprep.subr.bf16.mxu1 %v3021_v4  ;;  %v3053_v2 = vpack.c.bf16 %v1084_v0, %v1080_v63  ;;  %v1079_v4 = vld [vmem:[%s5246_s6 + $0x290] sm:$0xff]  ;;  %v1033_v63 = vld [vmem:[%s5246_s6 + $0x120] sm:$0xff]  ;;  %v1038_v0 = vld [vmem:[%s5246_s6 + $0x148] sm:$0xff] }
 0x149   :  { %v3055_v9 = vpack.c.bf16 %v1083_v6, %v1079_v4 }
 0x14b   :  { %3024 = vmatpush1.bf16.msra.mxu1 %v3023_v12  ;;  %v1088_v12 = vld [vmem:[%s5246_s6 + $0x2d8] sm:$0xff] }
 0x14c   :  { %3026 = vmatprep.subr.bf16.mxu1 %v3025_v21  ;;  %v3057_v8 = vpack.c.bf16 %v1092_v19, %v1088_v12  ;;  %v1087_v21 = vld [vmem:[%s5246_s6 + $0x2d0] sm:$0xff]  ;;  %v1041_v12 = vld [vmem:[%s5246_s6 + $0x160] sm:$0xff]  ;;  %v1046_v19 = vld [vmem:[%s5246_s6 + $0x188] sm:$0xff] }
 0x14d   :  { %v3059_v27 = vpack.c.bf16 %v1091_v26, %v1087_v21 }
 0x14f   :  { %3028 = vmatpush1.bf16.msra.mxu1 %v3027_v34 }
 0x150   :  { %3030 = vmatprep.subr.bf16.mxu1 %v3029_v41 }
 0x153   :  { %3032 = vmatpush1.bf16.msra.mxu1 %v3031_v44 }
 0x154   :  { %3034 = vmatprep.subr.bf16.mxu1 %v3033_v50 }
 0x157   :  { %3036 = vmatpush1.bf16.msra.mxu1 %v3035_v24 }
 0x158   :  { %3038 = vmatprep.subr.bf16.mxu1 %v3037_v60  ;;  %v1002_v60 = vld [vmem:[%s5246_s6 + $0x28] sm:$0xff] }
 0x15b   :  { %3040 = vmatpush1.bf16.msra.mxu1 %v3039_v32  ;;  %v1001_v32 = vld [vmem:[%s5246_s6 + $0x20] sm:$0xff] }
 0x15c   :  { %3042 = vmatprep.subr.bf16.mxu1 %v3041_v39  ;;  %v1005_v39 = vld [vmem:[%s5246_s6 + $0x40] sm:$0xff] }
 0x15d   :  { %v2899_v14 = vpack.c.bf16 %v1009_v49, %v1005_v39 }
 0x15f   :  { %3044 = vmatpush1.bf16.msra.mxu1 %v3043_v3  ;;  %v1018_v3 = vld [vmem:[%s5246_s6 + $0xa8] sm:$0xff] }
 0x160   :  { %3046 = vmatprep.subr.bf16.mxu1 %v3045_v38  ;;  %v2901_v23 = vpack.c.bf16 %v1018_v3, %v1014_v58  ;;  %v1013_v38 = vld [vmem:[%s5246_s6 + $0x80] sm:$0xff] }
 0x161   :  { %v2903_v62 = vpack.c.bf16 %v1017_v42, %v1013_v38  ;;  %v1085_v58 = vld [vmem:[%s5246_s6 + $0x2c0] sm:$0xff]  ;;  %v1098_v38 = vld [vmem:[%s5246_s6 + $0x328] sm:$0xff]  ;;  %v1096_v42 = vld [vmem:[%s5246_s6 + $0x318] sm:$0xff] }
 0x162   :  { %v1089_v3 = vld [vmem:[%s5246_s6 + $0x2e0] sm:$0xff] }
 0x163   :  { %3048 = vmatpush1.bf16.msra.mxu1 %v3047_v59  ;;  %v1026_v59 = vld [vmem:[%s5246_s6 + $0xe8] sm:$0xff] }
 0x164   :  { %3050 = vmatprep.subr.bf16.mxu1 %v3049_v5  ;;  %v2905_v1 = vpack.c.bf16 %v1026_v59, %v1022_v55  ;;  %v1021_v5 = vld [vmem:[%s5246_s6 + $0xc0] sm:$0xff]  ;;  %v1100_v59 = vld [vmem:[%s5246_s6 + $0x338] sm:$0xff] }
 0x167   :  { %3052 = vmatpush1.bf16.msra.mxu1 %v3051_v29  ;;  %v1029_v29 = vld [vmem:[%s5246_s6 + $0x100] sm:$0xff] }
 0x168   :  { %3054 = vmatprep.subr.bf16.mxu1 %v3053_v2  ;;  %v1042_v2 = vld [vmem:[%s5246_s6 + $0x168] sm:$0xff]  ;;  %v2911_v4 = vpack.c.bf16 %v1033_v63, %v1029_v29  ;;  %v1104_v63 = vld [vmem:[%s5246_s6 + $0x358] sm:$0xff] }
 0x169   :  { %v2913_v6 = vpack.c.bf16 %v1042_v2, %v1038_v0  ;;  %v1106_v29 = vld [vmem:[%s5246_s6 + $0x368] sm:$0xff]  ;;  %v1108_v2 = vld [vmem:[%s5246_s6 + $0x378] sm:$0xff] }
 0x16b   :  { %3056 = vmatpush1.bf16.msra.mxu1 %v3055_v9  ;;  %v1037_v9 = vld [vmem:[%s5246_s6 + $0x140] sm:$0xff] }
 0x16c   :  { %3058 = vmatprep.subr.bf16.mxu1 %v3057_v8  ;;  %v1050_v8 = vld [vmem:[%s5246_s6 + $0x1a8] sm:$0xff]  ;;  %v2915_v21 = vpack.c.bf16 %v1041_v12, %v1037_v9  ;;  %v3065_v9 = vpack.c.bf16 %v1108_v2, %v1104_v63 }
 0x16d   :  { %v2917_v26 = vpack.c.bf16 %v1050_v8, %v1046_v19  ;;  %v1103_v19 = vld [vmem:[%s5246_s6 + $0x350] sm:$0xff]  ;;  %v1134_v2 = vld [vmem:[%s5246_s6 + $0x448] sm:$0xff] }
 0x16e   :  { %v1107_v8 = vld [vmem:[%s5246_s6 + $0x370] sm:$0xff] }
 0x16f   :  { %3060 = vmatpush1.bf16.msra.mxu1 %v3059_v27  ;;  %v1045_v27 = vld [vmem:[%s5246_s6 + $0x180] sm:$0xff] }
 0x1cb   :  { %v2566_v18 = vpop.f32.mrb[4].mxu0 }
 0x1cc   :  { %v2567_v51 = vpop.f32.mrb[5].mxu0 }
 0x1cd   :  { %v2568_v56 = vadd.f32 %v2567_v51, %v2566_v18  ;;  %v651_v51 = vld [vmem:[%s5244_s4] sm:$0x1] }
 0x1db   :  { %v500_v10 = vpop.f32.mrb[0].mxu1 }
 0x1dc   :  { %v501_v15 = vadd.f32 %v2568_v56, %v500_v10  ;;  %v502_v20 = vpop.f32.mrb[1].mxu1  ;;  %v660_v56 = vld [vmem:[%s5242_s2 + $0x10] sm:$0xff]  ;;  %v1025_v10 = vld [vmem:[%s5246_s6 + $0xe0] sm:$0xff] }
 0x1dd   :  { %v1034_v20 = vld [vmem:[%s5246_s6 + $0x128] sm:$0xff]  ;;  %v2907_v22 = vpack.c.bf16 %v1025_v10, %v1021_v5  ;;  %v3061_v5 = vpack.c.bf16 %v1100_v59, %v1096_v42 }
 0x1de   :  { %v504_v41 = vmul.f32 0.008196721, %v501_v15  ;;  %v1030_v15 = vld [vmem:[%s5246_s6 + $0x108] sm:$0xff] }
 0x1df   :  { %v2909_v28 = vpack.c.bf16 %v1034_v20, %v1030_v15  ;;  %v1095_v15 = vld [vmem:[%s5246_s6 + $0x310] sm:$0xff]  ;;  %3062 = vmatprep.subr.bf16.mxu1 %v3061_v5 }
 0x1e0   :  { %v649_v46 = vmul.f32 %v504_v41, %v504_v41  ;;  %v1099_v20 = vld [vmem:[%s5246_s6 + $0x330] sm:$0xff] }
 0x1eb   :  { %v2601_v34 = vpop.f32.mrb[6].mxu0 }
 0x1ec   :  { %v2602_v36 = vpop.f32.mrb[7].mxu0 }
 0x1ed   :  { %v2603_v40 = vadd.f32 %v2602_v36, %v2601_v34  ;;  %v1049_v34 = vld [vmem:[%s5246_s6 + $0x1a0] sm:$0xff]  ;;  %v1054_v36 = vld [vmem:[%s5246_s6 + $0x1c8] sm:$0xff] }
 0x215   :  { %v644_v17 = vpop.f32.mrb[2].mxu1 }
 0x216   :  { %v645_v43 = vadd.f32 %v2603_v40, %v644_v17  ;;  %v646_v44 = vpop.f32.mrb[3].mxu1  ;;  %v1058_v40 = vld [vmem:[%s5246_s6 + $0x1e8] sm:$0xff] }
 0x217   :  { %v2921_v17 = vpack.c.bf16 %v1058_v40, %v1054_v36  ;;  %v1057_v44 = vld [vmem:[%s5246_s6 + $0x1e0] sm:$0xff]  ;;  %v1116_v40 = vld [vmem:[%s5246_s6 + $0x3b8] sm:$0xff] }
 0x218   :  { %v648_v47 = vmul.f32 0.008196721, %v645_v43  ;;  %v1053_v43 = vld [vmem:[%s5246_s6 + $0x1c0] sm:$0xff] }
 0x21a   :  { %v650_v50 = vsub.f32 %v648_v47, %v649_v46  ;;  %v1062_v46 = vld [vmem:[%s5246_s6 + $0x208] sm:$0xff] }
 0x21b   :  { %v1066_v47 = vld [vmem:[%s5246_s6 + $0x228] sm:$0xff] }
 0x21c   :  { %v652_v18 = vadd.f32 1e-05, %v650_v50  ;;  %v2923_v50 = vpack.c.bf16 %v1057_v44, %v1053_v43 }
 0x21e   :  { %3370 = vrsqrt.f32 %v652_v18  ;;  %v2925_v18 = vpack.c.bf16 %v1066_v47, %v1062_v46  ;;  %v1111_v46 = vld [vmem:[%s5246_s6 + $0x390] sm:$0xff] }
 0x21f   :  { %v1115_v47 = vld [vmem:[%s5246_s6 + $0x3b0] sm:$0xff] }
 0x228   :  { %v3371_v53 = vpop.eup %3370 }
 0x229   :  { %v654_v54 = vmul.f32 %v3371_v53, %v651_v51  ;;  %v1061_v51 = vld [vmem:[%s5246_s6 + $0x200] sm:$0xff] }
 0x22a   :  { %v1065_v53 = vld [vmem:[%s5246_s6 + $0x220] sm:$0xff] }
 0x22b   :  { %2520 = vmatmul.mubr.msk.f32.vlgmr.msra.gmra.mrb[8].mxu0 %vm662_vm7, %v654_v54  ;;  %v656_v24 = vmul.f32 %v654_v54, %v504_v41  ;;  %v2919_v41 = vpack.c.bf16 %v1049_v34, %v1045_v27  ;;  %v1114_v27 = vld [vmem:[%s5246_s6 + $0x3a8] sm:$0xff]  ;;  %v1112_v34 = vld [vmem:[%s5246_s6 + $0x398] sm:$0xff] }
 0x22c   :  { %738 = vmatpush1.msra.mxu0 %v660_v56  ;;  %801 = vmatprep.mubr.f32.mxu0 %v3398_v7  ;;  %v3069_v43 = vpack.c.bf16 %v1116_v40, %v1112_v34  ;;  %v1133_v40 = vld [vmem:[%s5246_s6 + $0x440] sm:$0xff] }
 0x22d   :  { %811 = vmatprep.subr.mxu0 %v3960_v45  ;;  %v657_v61 = vsub.f32 %v655_v25, %v656_v24  ;;  %v2893_v45 = vpack.c.bf16 %v1002_v60, %v998_v57  ;;  %v2927_v24 = vpack.c.bf16 %v1065_v53, %v1061_v51  ;;  %v1069_v57 = vld [vmem:[%s5246_s6 + $0x240] sm:$0xff]  ;;  %v1122_v51 = vld [vmem:[%s5246_s6 + $0x3e8] sm:$0xff]  ;;  %v1120_v53 = vld [vmem:[%s5246_s6 + $0x3d8] sm:$0xff] }
 0x22e   :  { %v1073_v60 = vld [vmem:[%s5246_s6 + $0x260] sm:$0xff] }
 0x22f   :  { %2521 = vmatmul.mubr.msk.f32.vlgmr.msra.gmra.mrb[10].mxu0 %vm662_vm7, %v654_v54  ;;  %v1070_v54 = vld [vmem:[%s5246_s6 + $0x248] sm:$0xff] }
 0x230   :  { %812 = vmatpush1.msra.mxu0 %v3965_v48  ;;  %875 = vmatprep.mubr.f32.mxu0 %v3398_v7  ;;  %v1010_v48 = vld [vmem:[%s5246_s6 + $0x68] sm:$0xff] }
 0x231   :  { %882 = vmatprep.subr.mxu0 %v3970_v52  ;;  %v2895_v52 = vpack.c.bf16 %v1001_v32, %v997_v30  ;;  %v2897_v37 = vpack.c.bf16 %v1010_v48, %v1006_v31  ;;  %v2931_v30 = vpack.c.bf16 %v1073_v60, %v1069_v57  ;;  %v1077_v31 = vld [vmem:[%s5246_s6 + $0x280] sm:$0xff] }
 0x232   :  { %v1081_v48 = vld [vmem:[%s5246_s6 + $0x2a0] sm:$0xff] }
 0x233   :  { %2522 = vmatmul.mubr.msk.f32.vlgmr.msra.gmra.mrb[12].mxu0 %vm662_vm7, %v657_v61  ;;  %v2935_v39 = vpack.c.bf16 %v1081_v48, %v1077_v31  ;;  %v1130_v31 = vld [vmem:[%s5246_s6 + $0x428] sm:$0xff]  ;;  %v1128_v48 = vld [vmem:[%s5246_s6 + $0x418] sm:$0xff] }
 0x234   :  { %883 = vmatpush1.msra.mxu0 %v660_v56  ;;  %946 = vmatprep.mubr.f32.mxu0 %v3398_v7  ;;  %v1074_v56 = vld [vmem:[%s5246_s6 + $0x268] sm:$0xff] }
 0x235   :  { %2894 = vmatprep.subr.bf16.mxu0 %v2893_v45  ;;  %v2929_v25 = vpack.c.bf16 %v1074_v56, %v1070_v54  ;;  %v1082_v45 = vld [vmem:[%s5246_s6 + $0x2a8] sm:$0xff]  ;;  %v1124_v56 = vld [vmem:[%s5246_s6 + $0x3f8] sm:$0xff] }
 0x236   :  { %v3073_v57 = vpack.c.bf16 %v1124_v56, %v1120_v53  ;;  %v1146_v53 = vld [vmem:[%s5246_s6 + $0x4a8] sm:$0xff]  ;;  %v1148_v56 = vld [vmem:[%s5246_s6 + $0x4b8] sm:$0xff] }
 0x237   :  { %2523 = vmatmul.mubr.msk.f32.vlgmr.msra.gmra.mrb[14].mxu0 %vm662_vm7, %v657_v61  ;;  %v1078_v61 = vld [vmem:[%s5246_s6 + $0x288] sm:$0xff] }
 0x238   :  { %2896 = vmatpush1.bf16.msra.mxu0 %v2895_v52  ;;  %v2933_v32 = vpack.c.bf16 %v1082_v45, %v1078_v61  ;;  %v1086_v52 = vld [vmem:[%s5246_s6 + $0x2c8] sm:$0xff]  ;;  %v1119_v61 = vld [vmem:[%s5246_s6 + $0x3d0] sm:$0xff] }
 0x239   :  { %2898 = vmatprep.subr.bf16.mxu0 %v2897_v37  ;;  %v1090_v37 = vld [vmem:[%s5246_s6 + $0x2e8] sm:$0xff]  ;;  %v1123_v45 = vld [vmem:[%s5246_s6 + $0x3f0] sm:$0xff] }
 0x23a   :  { %v2937_v49 = vpack.c.bf16 %v1090_v37, %v1086_v52  ;;  %v1132_v37 = vld [vmem:[%s5246_s6 + $0x438] sm:$0xff] }
 0x23c   :  { %2900 = vmatpush1.bf16.msra.mxu0 %v2899_v14  ;;  %v2939_v14 = vpack.c.bf16 %v1089_v3, %v1085_v58 }
 0x23d   :  { %2902 = vmatprep.subr.bf16.mxu0 %v2901_v23  ;;  %v1094_v23 = vld [vmem:[%s5246_s6 + $0x308] sm:$0xff] }
 0x23e   :  { %v2941_v55 = vpack.c.bf16 %v1098_v38, %v1094_v23 }
 0x240   :  { %2904 = vmatpush1.bf16.msra.mxu0 %v2903_v62  ;;  %v1093_v62 = vld [vmem:[%s5246_s6 + $0x300] sm:$0xff] }
 0x241   :  { %2906 = vmatprep.subr.bf16.mxu0 %v2905_v1  ;;  %v1097_v1 = vld [vmem:[%s5246_s6 + $0x320] sm:$0xff] }
 0x242   :  { %v2943_v10 = vpack.c.bf16 %v1097_v1, %v1093_v62 }
 0x244   :  { %2908 = vmatpush1.bf16.msra.mxu0 %v2907_v22  ;;  %v3063_v22 = vpack.c.bf16 %v1099_v20, %v1095_v15 }
 0x245   :  { %2910 = vmatprep.subr.bf16.mxu0 %v2909_v28  ;;  %v1102_v28 = vld [vmem:[%s5246_s6 + $0x348] sm:$0xff] }
 0x246   :  { %3064 = vmatpush1.bf16.msra.mxu1 %v3063_v22  ;;  %v2945_v0 = vpack.c.bf16 %v1106_v29, %v1102_v28 }
 0x247   :  { %3066 = vmatprep.subr.bf16.mxu1 %v3065_v9  ;;  %v1138_v9 = vld [vmem:[%s5246_s6 + $0x468] sm:$0xff] }
 0x248   :  { %2912 = vmatpush1.bf16.msra.mxu0 %v2911_v4  ;;  %v1101_v4 = vld [vmem:[%s5246_s6 + $0x340] sm:$0xff] }
 0x249   :  { %2914 = vmatprep.subr.bf16.mxu0 %v2913_v6  ;;  %v1105_v6 = vld [vmem:[%s5246_s6 + $0x360] sm:$0xff] }
 0x24a   :  { %v2947_v12 = vpack.c.bf16 %v1105_v6, %v1101_v4 }
 0x24c   :  { %2916 = vmatpush1.bf16.msra.mxu0 %v2915_v21  ;;  %v3067_v21 = vpack.c.bf16 %v1107_v8, %v1103_v19  ;;  %v1140_v19 = vld [vmem:[%s5246_s6 + $0x478] sm:$0xff] }
 0x24d   :  { %2918 = vmatprep.subr.bf16.mxu0 %v2917_v26  ;;  %v1110_v26 = vld [vmem:[%s5246_s6 + $0x388] sm:$0xff] }
 0x24e   :  { %3068 = vmatpush1.bf16.msra.mxu1 %v3067_v21  ;;  %v2949_v36 = vpack.c.bf16 %v1114_v27, %v1110_v26 }
 0x24f   :  { %3070 = vmatprep.subr.bf16.mxu1 %v3069_v43 }
 0x250   :  { %2920 = vmatpush1.bf16.msra.mxu0 %v2919_v41  ;;  %v1109_v41 = vld [vmem:[%s5246_s6 + $0x380] sm:$0xff] }
 0x251   :  { %2922 = vmatprep.subr.bf16.mxu0 %v2921_v17  ;;  %v1113_v17 = vld [vmem:[%s5246_s6 + $0x3a0] sm:$0xff] }
 0x252   :  { %v2951_v44 = vpack.c.bf16 %v1113_v17, %v1109_v41  ;;  %v1137_v41 = vld [vmem:[%s5246_s6 + $0x460] sm:$0xff] }
 0x254   :  { %2924 = vmatpush1.bf16.msra.mxu0 %v2923_v50  ;;  %v3071_v50 = vpack.c.bf16 %v1115_v47, %v1111_v46  ;;  %v1135_v47 = vld [vmem:[%s5246_s6 + $0x450] sm:$0xff] }
 0x255   :  { %2926 = vmatprep.subr.bf16.mxu0 %v2925_v18  ;;  %v1118_v18 = vld [vmem:[%s5246_s6 + $0x3c8] sm:$0xff] }
 0x256   :  { %3072 = vmatpush1.bf16.msra.mxu1 %v3071_v50  ;;  %v2953_v54 = vpack.c.bf16 %v1122_v51, %v1118_v18  ;;  %v1139_v50 = vld [vmem:[%s5246_s6 + $0x470] sm:$0xff]  ;;  %v1142_v18 = vld [vmem:[%s5246_s6 + $0x488] sm:$0xff] }
 0x257   :  { %3074 = vmatprep.subr.bf16.mxu1 %v3073_v57  ;;  %v3083_v57 = vpack.c.bf16 %v1139_v50, %v1135_v47 }
 0x258   :  { %2928 = vmatpush1.bf16.msra.mxu0 %v2927_v24  ;;  %v1117_v24 = vld [vmem:[%s5246_s6 + $0x3c0] sm:$0xff] }
 0x259   :  { %2930 = vmatprep.subr.bf16.mxu0 %v2929_v25  ;;  %v1121_v25 = vld [vmem:[%s5246_s6 + $0x3e0] sm:$0xff] }
 0x25a   :  { %v2955_v60 = vpack.c.bf16 %v1121_v25, %v1117_v24  ;;  %v2963_v25 = vpack.c.bf16 %v1137_v41, %v1133_v40  ;;  %v1180_v40 = vld [vmem:[%s5246_s6 + $0x5b8] sm:$0xff] }
 0x25c   :  { %2932 = vmatpush1.bf16.msra.mxu0 %v2931_v30  ;;  %v3075_v30 = vpack.c.bf16 %v1123_v45, %v1119_v61  ;;  %v1145_v61 = vld [vmem:[%s5246_s6 + $0x4a0] sm:$0xff]  ;;  %v2965_v45 = vpack.c.bf16 %v1146_v53, %v1142_v18  ;;  %v1175_v18 = vld [vmem:[%s5246_s6 + $0x590] sm:$0xff]  ;;  %v1182_v53 = vld [vmem:[%s5246_s6 + $0x5c8] sm:$0xff] }
 0x25d   :  { %2934 = vmatprep.subr.bf16.mxu0 %v2933_v32  ;;  %v1126_v32 = vld [vmem:[%s5246_s6 + $0x408] sm:$0xff] }
 0x25e   :  { %3076 = vmatpush1.bf16.msra.mxu1 %v3075_v30  ;;  %v2957_v52 = vpack.c.bf16 %v1130_v31, %v1126_v32  ;;  %v1143_v32 = vld [vmem:[%s5246_s6 + $0x490] sm:$0xff] }
 0x25f   :  { %v1147_v31 = vld [vmem:[%s5246_s6 + $0x4b0] sm:$0xff] }
 0x260   :  { %2936 = vmatpush1.bf16.msra.mxu0 %v2935_v39  ;;  %v3077_v39 = vpack.c.bf16 %v1132_v37, %v1128_v48  ;;  %v1150_v48 = vld [vmem:[%s5246_s6 + $0x4c8] sm:$0xff]  ;;  %v1152_v37 = vld [vmem:[%s5246_s6 + $0x4d8] sm:$0xff] }
 0x261   :  { %2938 = vmatprep.subr.bf16.mxu0 %v2937_v49  ;;  %v953_v49 = vlaneseq }
 0x262   :  { %3078 = vmatprep.subr.bf16.mxu1 %v3077_v39  ;;  %v1156_v39 = vld [vmem:[%s5246_s6 + $0x4f8] sm:$0xff] }
 0x263   :  { %v954_v58 = vshrl.u32 %v953_v49, 7 }
 0x264   :  { %2940 = vmatpush1.bf16.msra.mxu0 %v2939_v14 }
 0x265   :  { %2942 = vmatprep.subr.bf16.mxu0 %v2941_v55  ;;  %v4390_v3 = vsub.s32 0, %v954_v58  ;;  %v3087_v58 = vpack.c.bf16 %v1147_v31, %v1143_v32  ;;  %v1183_v32 = vld [vmem:[%s5246_s6 + $0x5d0] sm:$0xff] }
 0x266   :  { %v1187_v31 = vld [vmem:[%s5246_s6 + $0x5f0] sm:$0xff] }
 0x268   :  { %2944 = vmatpush1.bf16.msra.mxu0 %v2943_v10 }
 0x269   :  { %2946 = vmatprep.subr.bf16.mxu0 %v2945_v0 }
 0x26c   :  { %2948 = vmatpush1.bf16.msra.mxu0 %v2947_v12  ;;  %v1136_v12 = vld [vmem:[%s5246_s6 + $0x458] sm:$0xff] }
 0x26d   :  { %2950 = vmatprep.subr.bf16.mxu0 %v2949_v36  ;;  %v3081_v46 = vpack.c.bf16 %v1140_v19, %v1136_v12  ;;  %v1169_v12 = vld [vmem:[%s5246_s6 + $0x560] sm:$0xff] }
 0x270   :  { %2952 = vmatpush1.bf16.msra.mxu0 %v2951_v44  ;;  %v2961_v44 = vpack.c.bf16 %v1138_v9, %v1134_v2  ;;  %v1172_v2 = vld [vmem:[%s5246_s6 + $0x578] sm:$0xff]  ;;  %v1165_v9 = vld [vmem:[%s5246_s6 + $0x540] sm:$0xff] }
 0x271   :  { %2954 = vmatprep.subr.bf16.mxu0 %v2953_v54  ;;  %v1144_v54 = vld [vmem:[%s5246_s6 + $0x498] sm:$0xff]  ;;  %v2979_v41 = vpack.c.bf16 %v1169_v12, %v1165_v9  ;;  %v1205_v9 = vld [vmem:[%s5246_s6 + $0x680] sm:$0xff] }
 0x272   :  { %v3085_v30 = vpack.c.bf16 %v1148_v56, %v1144_v54  ;;  %v1186_v54 = vld [vmem:[%s5246_s6 + $0x5e8] sm:$0xff]  ;;  %v1184_v56 = vld [vmem:[%s5246_s6 + $0x5d8] sm:$0xff]  ;;  %v1209_v12 = vld [vmem:[%s5246_s6 + $0x6a0] sm:$0xff] }
 0x274   :  { %2956 = vmatpush1.bf16.msra.mxu0 %v2955_v60  ;;  %v1141_v60 = vld [vmem:[%s5246_s6 + $0x480] sm:$0xff] }
 0x275   :  { %2958 = vmatprep.subr.bf16.mxu0 %v2957_v52  ;;  %v1154_v52 = vld [vmem:[%s5246_s6 + $0x4e8] sm:$0xff]  ;;  %v2967_v49 = vpack.c.bf16 %v1145_v61, %v1141_v60  ;;  %v1181_v60 = vld [vmem:[%s5246_s6 + $0x5c0] sm:$0xff] }
 0x276   :  { %v1185_v61 = vld [vmem:[%s5246_s6 + $0x5e0] sm:$0xff] }
 0x2fe   :  { %v732_v14 = vpop.f32.mrb[8].mxu0 }
 0x2ff   :  { %v956_v23 = vrot.slane %v732_v14, %v4390_v3  ;;  %v734_v38 = vpop.f32.mrb[9].mxu0  ;;  %v1149_v14 = vld [vmem:[%s5246_s6 + $0x4c0] sm:$0xff] }
 0x300   :  { %v960_v42 = vrot.slane %v734_v38, %v4390_v3  ;;  %v2969_v38 = vpack.c.bf16 %v1154_v52, %v1150_v48  ;;  %v1190_v48 = vld [vmem:[%s5246_s6 + $0x608] sm:$0xff] }
 0x301   :  { %v969_v55 = vmul.f32 %v956_v23, %v3884_v33  ;;  %v1125_v33 = vld [vmem:[%s5246_s6 + $0x400] sm:$0xff]  ;;  %v1194_v52 = vld [vmem:[%s5246_s6 + $0x628] sm:$0xff] }
 0x302   :  { %v970_v59 = vmul.f32 %v960_v42, %v3888_v35  ;;  %v803_v62 = vpop.f32.mrb[10].mxu0  ;;  %v1129_v35 = vld [vmem:[%s5246_s6 + $0x420] sm:$0xff]  ;;  %v3089_v42 = vpack.c.bf16 %v1156_v39, %v1152_v37  ;;  %v1192_v37 = vld [vmem:[%s5246_s6 + $0x618] sm:$0xff] }
 0x303   :  { %v964_v1 = vrot.slane %v803_v62, %v4390_v3  ;;  %v805_v5 = vpop.f32.mrb[11].mxu0  ;;  %v2959_v34 = vpack.c.bf16 %v1129_v35, %v1125_v33  ;;  %v1153_v23 = vld [vmem:[%s5246_s6 + $0x4e0] sm:$0xff]  ;;  %v1158_v62 = vld [vmem:[%s5246_s6 + $0x508] sm:$0xff]  ;;  %v1159_v33 = vld [vmem:[%s5246_s6 + $0x510] sm:$0xff] }
 0x304   :  { %v968_v10 = vrot.slane %v805_v5, %v4390_v3  ;;  %v1160_v5 = vld [vmem:[%s5246_s6 + $0x518] sm:$0xff]  ;;  %v1163_v35 = vld [vmem:[%s5246_s6 + $0x530] sm:$0xff] }
 0x305   :  { %v971_v15 = vmul.f32 %v964_v1, %v3895_v11  ;;  %v1127_v11 = vld [vmem:[%s5246_s6 + $0x410] sm:$0xff]  ;;  %v1162_v1 = vld [vmem:[%s5246_s6 + $0x528] sm:$0xff]  ;;  %v1196_v39 = vld [vmem:[%s5246_s6 + $0x638] sm:$0xff] }
 0x306   :  { %v972_v20 = vmul.f32 %v968_v10, %v3900_v16  ;;  %v877_v22 = vpop.f32.mrb[12].mxu0  ;;  %v1131_v16 = vld [vmem:[%s5246_s6 + $0x430] sm:$0xff]  ;;  %v1164_v10 = vld [vmem:[%s5246_s6 + $0x538] sm:$0xff] }
 0x307   :  { %v976_v28 = vrot.slane %v877_v22, %v4390_v3  ;;  %v879_v29 = vpop.f32.mrb[13].mxu0  ;;  %v3079_v36 = vpack.c.bf16 %v1131_v16, %v1127_v11  ;;  %v1157_v22 = vld [vmem:[%s5246_s6 + $0x500] sm:$0xff]  ;;  %v1170_v11 = vld [vmem:[%s5246_s6 + $0x568] sm:$0xff]  ;;  %v1168_v16 = vld [vmem:[%s5246_s6 + $0x558] sm:$0xff] }
 0x308   :  { %v980_v63 = vrot.slane %v879_v29, %v4390_v3  ;;  %v2973_v29 = vpack.c.bf16 %v1162_v1, %v1158_v62  ;;  %v1198_v62 = vld [vmem:[%s5246_s6 + $0x648] sm:$0xff] }
 0x309   :  { %v989_v0 = vadd.f32 %v976_v28, %v969_v55  ;;  %v1151_v55 = vld [vmem:[%s5246_s6 + $0x4d0] sm:$0xff]  ;;  %v1161_v28 = vld [vmem:[%s5246_s6 + $0x520] sm:$0xff]  ;;  %v1202_v1 = vld [vmem:[%s5246_s6 + $0x668] sm:$0xff] }
 0x30a   :  { %v990_v4 = vadd.f32 %v980_v63, %v970_v59  ;;  %v948_v6 = vpop.f32.mrb[14].mxu0  ;;  %v1155_v59 = vld [vmem:[%s5246_s6 + $0x4f0] sm:$0xff]  ;;  %v3093_v63 = vpack.c.bf16 %v1164_v10, %v1160_v5  ;;  %v1200_v5 = vld [vmem:[%s5246_s6 + $0x658] sm:$0xff] }
 0x30b   :  { %v984_v8 = vrot.slane %v948_v6, %v4390_v3  ;;  %v950_v21 = vpop.f32.mrb[15].mxu0  ;;  %v993_v17 = vmax.f32 %v989_v0, 0.0  ;;  %v1166_v0 = vld [vmem:[%s5246_s6 + $0x548] sm:$0xff]  ;;  %v3095_v6 = vpack.c.bf16 %v1163_v35, %v1159_v33  ;;  %v1204_v10 = vld [vmem:[%s5246_s6 + $0x678] sm:$0xff]  ;;  %v1199_v33 = vld [vmem:[%s5246_s6 + $0x650] sm:$0xff] }
 0x30c   :  { %v994_v26 = vmax.f32 %v990_v4, 0.0  ;;  %v988_v27 = vrot.slane %v950_v21, %v4390_v3  ;;  %v2975_v4 = vpack.c.bf16 %v1161_v28, %v1157_v22  ;;  %v2977_v19 = vpack.c.bf16 %v1170_v11, %v1166_v0  ;;  %v1167_v21 = vld [vmem:[%s5246_s6 + $0x550] sm:$0xff]  ;;  %v1197_v22 = vld [vmem:[%s5246_s6 + $0x640] sm:$0xff]  ;;  %v1206_v0 = vld [vmem:[%s5246_s6 + $0x688] sm:$0xff] }
 0x30d   :  { %v4434_v43 = vadd.f32 %v984_v8, %v971_v15  ;;  %v2971_v15 = vpack.c.bf16 %v1153_v23, %v1149_v14  ;;  %v3097_v8 = vpack.c.bf16 %v1172_v2, %v1168_v16  ;;  %v1189_v14 = vld [vmem:[%s5246_s6 + $0x600] sm:$0xff]  ;;  %v1203_v35 = vld [vmem:[%s5246_s6 + $0x670] sm:$0xff]  ;;  %v1210_v11 = vld [vmem:[%s5246_s6 + $0x6a8] sm:$0xff] }
 0x30e   :  { %v992_v51 = vadd.f32 %v988_v27, %v972_v20  ;;  %1308 = vmatprep.mubr.f32.mxu0 %v994_v26  ;;  %1450 = vmatprep.mubr.f32.mxu1 %v994_v26  ;;  %v3091_v20 = vpack.c.bf16 %v1155_v59, %v1151_v55  ;;  %v1171_v26 = vld [vmem:[%s5246_s6 + $0x570] sm:$0xff]  ;;  %v1174_v27 = vld [vmem:[%s5246_s6 + $0x588] sm:$0xff]  ;;  %v1193_v23 = vld [vmem:[%s5246_s6 + $0x620] sm:$0xff] }
 0x30f   :  { %1309 = vmatmul.mubr.f32.vlgmr.msra.gmra.mrb[16].mxu0 %v993_v17  ;;  %1451 = vmatmul.mubr.f32.vlgmr.msra.gmra.mrb[4].mxu1 %v993_v17  ;;  %v3099_v17 = vpack.c.bf16 %v1171_v26, %v1167_v21  ;;  %v1191_v55 = vld [vmem:[%s5246_s6 + $0x610] sm:$0xff]  ;;  %v1201_v28 = vld [vmem:[%s5246_s6 + $0x660] sm:$0xff]  ;;  %v1208_v16 = vld [vmem:[%s5246_s6 + $0x698] sm:$0xff] }
 0x310   :  { %v996_v24 = vmax.f32 %v992_v51, 0.0  ;;  %2960 = vmatpush1.bf16.msra.mxu0 %v2959_v34  ;;  %3080 = vmatpush1.bf16.msra.mxu1 %v3079_v36  ;;  %v1178_v34 = vld [vmem:[%s5246_s6 + $0x5a8] sm:$0xff]  ;;  %v1176_v36 = vld [vmem:[%s5246_s6 + $0x598] sm:$0xff]  ;;  %v1179_v51 = vld [vmem:[%s5246_s6 + $0x5b0] sm:$0xff] }
 0x311   :  { %2962 = vmatprep.subr.bf16.mxu0 %v2961_v44  ;;  %3082 = vmatprep.subr.bf16.mxu1 %v3081_v46  ;;  %v1173_v44 = vld [vmem:[%s5246_s6 + $0x580] sm:$0xff]  ;;  %v2981_v47 = vpack.c.bf16 %v1178_v34, %v1174_v27  ;;  %v3101_v50 = vpack.c.bf16 %v1180_v40, %v1176_v36  ;;  %v1195_v59 = vld [vmem:[%s5246_s6 + $0x630] sm:$0xff]  ;;  %v1212_v2 = vld [vmem:[%s5246_s6 + $0x6b8] sm:$0xff] }
 0x312   :  { %2524 = vmatprep.mubr.msk.f32.mxu0 %vm360_vm6, %v996_v24  ;;  %2525 = vmatprep.mubr.msk.f32.mxu1 %vm360_vm6, %v996_v24  ;;  %v1177_v46 = vld [vmem:[%s5246_s6 + $0x5a0] sm:$0xff]  ;;  %v1188_v24 = vld [vmem:[%s5246_s6 + $0x5f8] sm:$0xff]  ;;  %v1207_v21 = vld [vmem:[%s5246_s6 + $0x690] sm:$0xff] }
 0x313   :  { %v1211_v26 = vld [vmem:[%s5246_s6 + $0x6b0] sm:$0xff]  ;;  %v1214_v27 = vld [vmem:[%s5246_s6 + $0x6c8] sm:$0xff]  ;;  %v1216_v36 = vld [vmem:[%s5246_s6 + $0x6d8] sm:$0xff] }
 0x314   :  { %2964 = vmatpush1.bf16.msra.mxu0 %v2963_v25  ;;  %3084 = vmatpush1.bf16.msra.mxu1 %v3083_v57  ;;  %v2983_v25 = vpack.c.bf16 %v1177_v46, %v1173_v44  ;;  %v3103_v57 = vpack.c.bf16 %v1179_v51, %v1175_v18  ;;  %v1218_v34 = vld [vmem:[%s5246_s6 + $0x6e8] sm:$0xff]  ;;  %v1220_v40 = vld [vmem:[%s5246_s6 + $0x6f8] sm:$0xff]  ;;  %v1213_v44 = vld [vmem:[%s5246_s6 + $0x6c0] sm:$0xff] }
 0x315   :  { %2966 = vmatprep.subr.bf16.mxu0 %v2965_v45  ;;  %3086 = vmatprep.subr.bf16.mxu1 %v3085_v30  ;;  %v2985_v45 = vpack.c.bf16 %v1186_v54, %v1182_v53  ;;  %v3105_v30 = vpack.c.bf16 %v1188_v24, %v1184_v56  ;;  %v1217_v46 = vld [vmem:[%s5246_s6 + $0x6e0] sm:$0xff]  ;;  %v1215_v18 = vld [vmem:[%s5246_s6 + $0x6d0] sm:$0xff]  ;;  %v1222_v53 = vld [vmem:[%s5246_s6 + $0x708] sm:$0xff] }
 0x316   :  { %v1219_v51 = vld [vmem:[%s5246_s6 + $0x6f0] sm:$0xff]  ;;  %v1226_v54 = vld [vmem:[%s5246_s6 + $0x728] sm:$0xff]  ;;  %v1224_v56 = vld [vmem:[%s5246_s6 + $0x718] sm:$0xff] }
 0x317   :  { %v1228_v24 = vld [vmem:[%s5246_s6 + $0x738] sm:$0xff] }
 0x318   :  { %2968 = vmatpush1.bf16.msra.mxu0 %v2967_v49  ;;  %3088 = vmatpush1.bf16.msra.mxu1 %v3087_v58  ;;  %v2987_v49 = vpack.c.bf16 %v1185_v61, %v1181_v60  ;;  %v3107_v58 = vpack.c.bf16 %v1187_v31, %v1183_v32  ;;  %v1221_v60 = vld [vmem:[%s5246_s6 + $0x700] sm:$0xff]  ;;  %v1223_v32 = vld [vmem:[%s5246_s6 + $0x710] sm:$0xff] }
 0x319   :  { %2970 = vmatprep.subr.bf16.mxu0 %v2969_v38  ;;  %3090 = vmatprep.subr.bf16.mxu1 %v3089_v42  ;;  %v2989_v38 = vpack.c.bf16 %v1194_v52, %v1190_v48  ;;  %v3109_v42 = vpack.c.bf16 %v1196_v39, %v1192_v37  ;;  %v1225_v61 = vld [vmem:[%s5246_s6 + $0x720] sm:$0xff]  ;;  %v1227_v31 = vld [vmem:[%s5246_s6 + $0x730] sm:$0xff]  ;;  %v1230_v48 = vld [vmem:[%s5246_s6 + $0x748] sm:$0xff] }
 0x31a   :  { %v1234_v52 = vld [vmem:[%s5246_s6 + $0x768] sm:$0xff]  ;;  %v1232_v37 = vld [vmem:[%s5246_s6 + $0x758] sm:$0xff] }
 0x31b   :  { %v1236_v39 = vld [vmem:[%s5246_s6 + $0x778] sm:$0xff] }
 0x31c   :  { %2972 = vmatpush1.bf16.msra.mxu0 %v2971_v15  ;;  %3092 = vmatpush1.bf16.msra.mxu1 %v3091_v20  ;;  %v2991_v15 = vpack.c.bf16 %v1193_v23, %v1189_v14  ;;  %v3111_v20 = vpack.c.bf16 %v1195_v59, %v1191_v55  ;;  %v1229_v14 = vld [vmem:[%s5246_s6 + $0x740] sm:$0xff]  ;;  %v3009_v23 = vpack.c.bf16 %v1234_v52, %v1230_v48  ;;  %v1231_v55 = vld [vmem:[%s5246_s6 + $0x750] sm:$0xff]  ;;  %v1620_v52 = vld [vmem:[%s5248_s8 + $0xf8] sm:$0xff] }
 0x31d   :  { %2974 = vmatprep.subr.bf16.mxu0 %v2973_v29  ;;  %3094 = vmatprep.subr.bf16.mxu1 %v3093_v63  ;;  %v2993_v29 = vpack.c.bf16 %v1202_v1, %v1198_v62  ;;  %v3113_v63 = vpack.c.bf16 %v1204_v10, %v1200_v5  ;;  %v1235_v59 = vld [vmem:[%s5246_s6 + $0x770] sm:$0xff]  ;;  %v1238_v5 = vld [vmem:[%s5246_s6 + $0x788] sm:$0xff]  ;;  %v1240_v10 = vld [vmem:[%s5246_s6 + $0x798] sm:$0xff] }
 0x31e   :  { %v3131_v1 = vpack.c.bf16 %v1235_v59, %v1231_v55  ;;  %v1619_v48 = vld [vmem:[%s5248_s8 + $0xf0] sm:$0xff] }
 0x320   :  { %2976 = vmatpush1.bf16.msra.mxu0 %v2975_v4  ;;  %3096 = vmatpush1.bf16.msra.mxu1 %v3095_v6  ;;  %v2995_v4 = vpack.c.bf16 %v1201_v28, %v1197_v22  ;;  %v3115_v6 = vpack.c.bf16 %v1203_v35, %v1199_v33  ;;  %v1237_v22 = vld [vmem:[%s5246_s6 + $0x780] sm:$0xff]  ;;  %v1607_v33 = vld [vmem:[%s5248_s8 + $0x90] sm:$0xff]  ;;  %v1608_v35 = vld [vmem:[%s5248_s8 + $0x98] sm:$0xff] }
 0x321   :  { %2978 = vmatprep.subr.bf16.mxu0 %v2977_v19  ;;  %3098 = vmatprep.subr.bf16.mxu1 %v3097_v8  ;;  %v2997_v19 = vpack.c.bf16 %v1210_v11, %v1206_v0  ;;  %v3117_v8 = vpack.c.bf16 %v1212_v2, %v1208_v16  ;;  %v1589_v28 = vld [vmem:[%s5248_s8] sm:$0xff]  ;;  %v995_v11 = vmax.f32 %v4434_v43, 0.0  ;;  %v3137_v2 = vpack.c.bf16 %v1608_v35, %v1607_v33  ;;  %v1610_v43 = vld [vmem:[%s5248_s8 + $0xa8] sm:$0xff] }
 0x324   :  { %2980 = vmatpush1.bf16.msra.mxu0 %v2979_v41  ;;  %3100 = vmatpush1.bf16.msra.mxu1 %v3099_v17  ;;  %v2999_v41 = vpack.c.bf16 %v1209_v12, %v1205_v9  ;;  %v3119_v17 = vpack.c.bf16 %v1211_v26, %v1207_v21  ;;  %v1609_v9 = vld [vmem:[%s5248_s8 + $0xa0] sm:$0xff]  ;;  %v1594_v21 = vld [vmem:[%s5248_s8 + $0x28] sm:$0xff]  ;;  %v1611_v26 = vld [vmem:[%s5248_s8 + $0xb0] sm:$0xff] }
 0x325   :  { %2982 = vmatprep.subr.bf16.mxu0 %v2981_v47  ;;  %3102 = vmatprep.subr.bf16.mxu1 %v3101_v50  ;;  %v3001_v47 = vpack.c.bf16 %v1218_v34, %v1214_v27  ;;  %v3121_v50 = vpack.c.bf16 %v1220_v40, %v1216_v36  ;;  %v1612_v27 = vld [vmem:[%s5248_s8 + $0xb8] sm:$0xff]  ;;  %v1595_v40 = vld [vmem:[%s5248_s8 + $0x30] sm:$0xff] }
 0x326   :  { %v3145_v36 = vpack.c.bf16 %v1612_v27, %v1611_v26  ;;  %v1621_v26 = vld [vmem:[%s5248_s8 + $0x100] sm:$0xff]  ;;  %v1622_v27 = vld [vmem:[%s5248_s8 + $0x108] sm:$0xff] }
 0x328   :  { %2984 = vmatpush1.bf16.msra.mxu0 %v2983_v25  ;;  %3104 = vmatpush1.bf16.msra.mxu1 %v3103_v57  ;;  %v3003_v25 = vpack.c.bf16 %v1217_v46, %v1213_v44  ;;  %v3123_v57 = vpack.c.bf16 %v1219_v51, %v1215_v18  ;;  %v1614_v44 = vld [vmem:[%s5248_s8 + $0xc8] sm:$0xff] }
 0x329   :  { %2986 = vmatprep.subr.bf16.mxu0 %v2985_v45  ;;  %3106 = vmatprep.subr.bf16.mxu1 %v3105_v30  ;;  %v3005_v45 = vpack.c.bf16 %v1226_v54, %v1222_v53  ;;  %v3125_v30 = vpack.c.bf16 %v1228_v24, %v1224_v56  ;;  %v1598_v18 = vld [vmem:[%s5248_s8 + $0x48] sm:$0xff]  ;;  %v1615_v53 = vld [vmem:[%s5248_s8 + $0xd0] sm:$0xff]  ;;  %v1616_v54 = vld [vmem:[%s5248_s8 + $0xd8] sm:$0xff] }
 0x32a   :  { %v3153_v56 = vpack.c.bf16 %v1616_v54, %v1615_v53  ;;  %v1599_v24 = vld [vmem:[%s5248_s8 + $0x50] sm:$0xff] }
 0x32c   :  { %2988 = vmatpush1.bf16.msra.mxu0 %v2987_v49  ;;  %3108 = vmatpush1.bf16.msra.mxu1 %v3107_v58  ;;  %v3007_v49 = vpack.c.bf16 %v1225_v61, %v1221_v60  ;;  %v3127_v58 = vpack.c.bf16 %v1227_v31, %v1223_v32  ;;  %v1617_v60 = vld [vmem:[%s5248_s8 + $0xe0] sm:$0xff]  ;;  %v1618_v61 = vld [vmem:[%s5248_s8 + $0xe8] sm:$0xff] }
 0x32d   :  { %2990 = vmatprep.subr.bf16.mxu0 %v2989_v38  ;;  %3110 = vmatprep.subr.bf16.mxu1 %v3109_v42  ;;  %v3129_v38 = vpack.c.bf16 %v1236_v39, %v1232_v37  ;;  %v1233_v42 = vld [vmem:[%s5246_s6 + $0x760] sm:$0xff]  ;;  %v1602_v32 = vld [vmem:[%s5248_s8 + $0x68] sm:$0xff]  ;;  %v3161_v37 = vpack.c.bf16 %v1620_v52, %v1619_v48  ;;  %v1603_v39 = vld [vmem:[%s5248_s8 + $0x70] sm:$0xff] }
 0x32e   :  { %v3011_v62 = vpack.c.bf16 %v1233_v42, %v1229_v14  ;;  %v1625_v48 = vld [vmem:[%s5248_s8 + $0x120] sm:$0xff]  ;;  %v1626_v52 = vld [vmem:[%s5248_s8 + $0x128] sm:$0xff] }
 0x330   :  { %2992 = vmatpush1.bf16.msra.mxu0 %v2991_v15  ;;  %3112 = vmatpush1.bf16.msra.mxu1 %v3111_v20  ;;  %v1605_v15 = vld [vmem:[%s5248_s8 + $0x80] sm:$0xff]  ;;  %v1606_v20 = vld [vmem:[%s5248_s8 + $0x88] sm:$0xff] }
 0x331   :  { %2994 = vmatprep.subr.bf16.mxu0 %v2993_v29  ;;  %3114 = vmatprep.subr.bf16.mxu1 %v3113_v63  ;;  %v1590_v29 = vld [vmem:[%s5248_s8 + $0x8] sm:$0xff]  ;;  %v1239_v63 = vld [vmem:[%s5246_s6 + $0x790] sm:$0xff]  ;;  %v3133_v0 = vpack.c.bf16 %v1606_v20, %v1605_v15 }
 0x332   :  { %v3135_v16 = vpack.c.bf16 %v1590_v29, %v1589_v28 }
 0x334   :  { %2996 = vmatpush1.bf16.msra.mxu0 %v2995_v4  ;;  %3116 = vmatpush1.bf16.msra.mxu1 %v3115_v6  ;;  %v1591_v4 = vld [vmem:[%s5248_s8 + $0x10] sm:$0xff]  ;;  %v1592_v6 = vld [vmem:[%s5248_s8 + $0x18] sm:$0xff] }
 0x335   :  { %2998 = vmatprep.subr.bf16.mxu0 %v2997_v19  ;;  %3118 = vmatprep.subr.bf16.mxu1 %v3117_v8  ;;  %v3139_v12 = vpack.c.bf16 %v1592_v6, %v1591_v4  ;;  %v3141_v19 = vpack.c.bf16 %v1610_v43, %v1609_v9  ;;  %v1593_v8 = vld [vmem:[%s5248_s8 + $0x20] sm:$0xff] }
 0x336   :  { %v3143_v34 = vpack.c.bf16 %v1594_v21, %v1593_v8 }
 0x338   :  { %3000 = vmatpush1.bf16.msra.mxu0 %v2999_v41  ;;  %3120 = vmatpush1.bf16.msra.mxu1 %v3119_v17  ;;  %v1596_v41 = vld [vmem:[%s5248_s8 + $0x38] sm:$0xff]  ;;  %v1613_v17 = vld [vmem:[%s5248_s8 + $0xc0] sm:$0xff] }
 0x339   :  { %3002 = vmatprep.subr.bf16.mxu0 %v3001_v47  ;;  %3122 = vmatprep.subr.bf16.mxu1 %v3121_v50  ;;  %v3147_v46 = vpack.c.bf16 %v1596_v41, %v1595_v40  ;;  %v3149_v47 = vpack.c.bf16 %v1614_v44, %v1613_v17  ;;  %v1597_v50 = vld [vmem:[%s5248_s8 + $0x40] sm:$0xff] }
 0x33a   :  { %v3151_v51 = vpack.c.bf16 %v1598_v18, %v1597_v50 }
 0x33c   :  { %3004 = vmatpush1.bf16.msra.mxu0 %v3003_v25  ;;  %3124 = vmatpush1.bf16.msra.mxu1 %v3123_v57  ;;  %v1600_v25 = vld [vmem:[%s5248_s8 + $0x58] sm:$0xff] }
 0x33d   :  { %3006 = vmatprep.subr.bf16.mxu0 %v3005_v45  ;;  %3126 = vmatprep.subr.bf16.mxu1 %v3125_v30  ;;  %v3155_v57 = vpack.c.bf16 %v1600_v25, %v1599_v24  ;;  %v3157_v45 = vpack.c.bf16 %v1618_v61, %v1617_v60  ;;  %v1601_v30 = vld [vmem:[%s5248_s8 + $0x60] sm:$0xff]  ;;  %v1624_v60 = vld [vmem:[%s5248_s8 + $0x118] sm:$0xff] }
 0x33e   :  { %v3159_v31 = vpack.c.bf16 %v1602_v32, %v1601_v30 }
 0x340   :  { %3008 = vmatpush1.bf16.msra.mxu0 %v3007_v49  ;;  %3128 = vmatpush1.bf16.msra.mxu1 %v3127_v58  ;;  %v1604_v49 = vld [vmem:[%s5248_s8 + $0x78] sm:$0xff] }
 0x341   :  { %3010 = vmatprep.subr.bf16.mxu0 %v3009_v23  ;;  %3130 = vmatprep.subr.bf16.mxu1 %v3129_v38  ;;  %v3163_v58 = vpack.c.bf16 %v1604_v49, %v1603_v39  ;;  %v1627_v39 = vld [vmem:[%s5248_s8 + $0x130] sm:$0xff]  ;;  %v1628_v49 = vld [vmem:[%s5248_s8 + $0x138] sm:$0xff] }
 0x344   :  { %3012 = vmatpush1.bf16.msra.mxu0 %v3011_v62  ;;  %3132 = vmatpush1.bf16.msra.mxu1 %v3131_v1 }
 0x345   :  { %1371 = vmatprep.subr.mxu0 %v1238_v5  ;;  %1513 = vmatprep.subr.mxu1 %v1240_v10 }
 0x348   :  { %1372 = vmatpush1.msra.mxu0 %v1237_v22  ;;  %1514 = vmatpush1.msra.mxu1 %v1239_v63 }
 0x349   :  { %1380 = vmatmul.mubr.f32.vlgmr.msra.gmra.mrb[16].mxu0 %v995_v11  ;;  %1522 = vmatmul.mubr.f32.vlgmr.msra.gmra.mrb[4].mxu1 %v995_v11 }
 0x34a   :  { %3134 = vmatprep.subr.bf16.mxu0 %v3133_v0  ;;  %3205 = vmatprep.subr.bf16.mxu1 %v3133_v0 }
 0x34b   :  { %3136 = vmatpush3.bf16.msra.mxu0 %v3135_v16  ;;  %3207 = vmatpush3.bf16.msra.mxu1 %v3135_v16 }
 0x34c   :  { %3138 = vmatprep.subr.bf16.mxu0 %v3137_v2  ;;  %3209 = vmatprep.subr.bf16.mxu1 %v3137_v2 }
 0x34f   :  { %3140 = vmatpush3.bf16.msra.mxu0 %v3139_v12  ;;  %3211 = vmatpush3.bf16.msra.mxu1 %v3139_v12 }
 0x350   :  { %3142 = vmatprep.subr.bf16.mxu0 %v3141_v19  ;;  %3213 = vmatprep.subr.bf16.mxu1 %v3141_v19 }
 0x353   :  { %3144 = vmatpush3.bf16.msra.mxu0 %v3143_v34  ;;  %3215 = vmatpush3.bf16.msra.mxu1 %v3143_v34 }
 0x354   :  { %3146 = vmatprep.subr.bf16.mxu0 %v3145_v36  ;;  %3217 = vmatprep.subr.bf16.mxu1 %v3145_v36 }
 0x357   :  { %3148 = vmatpush3.bf16.msra.mxu0 %v3147_v46  ;;  %3219 = vmatpush3.bf16.msra.mxu1 %v3147_v46  ;;  %v3166_v46 = vpack.c.bf16 %v1622_v27, %v1621_v26 }
 0x358   :  { %3150 = vmatprep.subr.bf16.mxu0 %v3149_v47  ;;  %3221 = vmatprep.subr.bf16.mxu1 %v3149_v47 }
 0x35b   :  { %3152 = vmatpush3.bf16.msra.mxu0 %v3151_v51  ;;  %3223 = vmatpush3.bf16.msra.mxu1 %v3151_v51 }
 0x35c   :  { %3154 = vmatprep.subr.bf16.mxu0 %v3153_v56  ;;  %3225 = vmatprep.subr.bf16.mxu1 %v3153_v56 }
 0x35f   :  { %3156 = vmatpush3.bf16.msra.mxu0 %v3155_v57  ;;  %3227 = vmatpush3.bf16.msra.mxu1 %v3155_v57  ;;  %v1623_v57 = vld [vmem:[%s5248_s8 + $0x110] sm:$0xff] }
 0x360   :  { %3158 = vmatprep.subr.bf16.mxu0 %v3157_v45  ;;  %3229 = vmatprep.subr.bf16.mxu1 %v3157_v45  ;;  %v3169_v32 = vpack.c.bf16 %v1624_v60, %v1623_v57  ;;  %v1945_v57 = vld [vmem:[%s5247_s7] sm:$0xff] }
 0x363   :  { %3160 = vmatpush3.bf16.msra.mxu0 %v3159_v31  ;;  %3231 = vmatpush3.bf16.msra.mxu1 %v3159_v31 }
 0x364   :  { %3162 = vmatprep.subr.bf16.mxu0 %v3161_v37  ;;  %3233 = vmatprep.subr.bf16.mxu1 %v3161_v37  ;;  %v3172_v37 = vpack.c.bf16 %v1626_v52, %v1625_v48  ;;  %v2320_v48 = vld [vmem:[%s5251_s11 + $0x100] sm:$0xff]  ;;  %v2321_v52 = vld [vmem:[%s5251_s11 + $0x108] sm:$0xff] }
 0x367   :  { %3164 = vmatpush3.bf16.msra.mxu0 %v3163_v58  ;;  %3235 = vmatpush3.bf16.msra.mxu1 %v3163_v58  ;;  %v3175_v58 = vpack.c.bf16 %v1628_v49, %v1627_v39  ;;  %v3324_v39 = vpack.c.bf16 %v2321_v52, %v2320_v48  ;;  %v2323_v49 = vld [vmem:[%s5251_s11 + $0x118] sm:$0xff]  ;;  %v2306_v48 = vld [vmem:[%s5251_s11 + $0x90] sm:$0xff] }
 0x368   :  { %3165 = vmatprep.subr.bf16.mxu0 %v3399_v13  ;;  %3236 = vmatprep.subr.bf16.mxu1 %v3399_v13 }
 0x41c   :  { %v4843_v14 = vpop.f32.mrb[16].mxu0  ;;  %v4845_v23 = vpop.f32.mrb[4].mxu1 }
 0x41d   :  { %v1528_v38 = vsel %vm237_vm4, %v4843_v14, 0.0  ;;  %v1557_v42 = vmul.f32 %v4843_v14, %v4843_v14  ;;  %v4851_v55 = vpop.f32.mrb[17].mxu0  ;;  %v4853_v59 = vpop.f32.mrb[5].mxu1 }
 0x41e   :  { %v1529_v62 = vrot.slane %v1528_v38, 4  ;;  %v1535_v1 = vsel %vm237_vm4, %v4851_v55, 0.0  ;;  %v1558_v5 = vmul.f32 %v4851_v55, %v4851_v55  ;;  %v1550_v20 = vsel %vm1549_vm8, %v4853_v59, 0.0 }
 0x41f   :  { %v1561_v10 = vsel %vm237_vm4, %v1557_v42, 0.0  ;;  %v1536_v15 = vrot.slane %v1535_v1, 4  ;;  %v1551_v33 = vrot.slane %v1550_v20, 4  ;;  %v1560_v35 = vmul.f32 %v4853_v59, %v4853_v59  ;;  %v1630_v42 = vld [vmem:[%s5248_s8 + $0x148] sm:$0xff] }
 0x420   :  { %v1530_v22 = vadd.f32 %v1529_v62, %v1528_v38  ;;  %v1562_v28 = vrot.slane %v1561_v10, 4  ;;  %v1568_v63 = vsel %vm237_vm4, %v1558_v5, 0.0  ;;  %v1629_v38 = vld [vmem:[%s5248_s8 + $0x140] sm:$0xff]  ;;  %v1632_v5 = vld [vmem:[%s5248_s8 + $0x158] sm:$0xff] }
 0x421   :  { %v1537_v29 = vadd.f32 %v1536_v15, %v1535_v1  ;;  %v1569_v2 = vrot.slane %v1568_v63, 4  ;;  %v1552_v4 = vadd.f32 %v1551_v33, %v1550_v20  ;;  %v1582_v6 = vsel %vm1549_vm8, %v1560_v35, 0.0  ;;  %v1631_v1 = vld [vmem:[%s5248_s8 + $0x150] sm:$0xff]  ;;  %v1633_v15 = vld [vmem:[%s5248_s8 + $0x160] sm:$0xff]  ;;  %v1634_v20 = vld [vmem:[%s5248_s8 + $0x168] sm:$0xff] }
 0x422   :  { %v1531_v0 = vrot.slane %v1530_v22, 2  ;;  %v1563_v11 = vadd.f32 %v1562_v28, %v1561_v10  ;;  %v1583_v8 = vrot.slane %v1582_v6, 4  ;;  %v3178_v62 = vpack.c.bf16 %v1630_v42, %v1629_v38  ;;  %v1635_v28 = vld [vmem:[%s5248_s8 + $0x170] sm:$0xff]  ;;  %v1637_v35 = vld [vmem:[%s5248_s8 + $0x180] sm:$0xff]  ;;  %v2325_v42 = vld [vmem:[%s5251_s11 + $0x128] sm:$0xff] }
 0x423   :  { %v1538_v16 = vrot.slane %v1537_v29, 2  ;;  %v1570_v12 = vadd.f32 %v1569_v2, %v1568_v63  ;;  %v1553_v19 = vrot.slane %v1552_v4, 2  ;;  %v3181_v10 = vpack.c.bf16 %v1632_v5, %v1631_v1  ;;  %v2324_v38 = vld [vmem:[%s5251_s11 + $0x120] sm:$0xff]  ;;  %v2326_v1 = vld [vmem:[%s5251_s11 + $0x130] sm:$0xff]  ;;  %v2327_v5 = vld [vmem:[%s5251_s11 + $0x138] sm:$0xff] }
 0x424   :  { %v1532_v9 = vadd.f32 %v1531_v0, %v1530_v22  ;;  %v1564_v43 = vrot.slane %v1563_v11, 2  ;;  %v1584_v41 = vadd.f32 %v1583_v8, %v1582_v6  ;;  %v3184_v22 = vpack.c.bf16 %v1634_v20, %v1633_v15  ;;  %v1638_v0 = vld [vmem:[%s5248_s8 + $0x188] sm:$0xff]  ;;  %v1639_v6 = vld [vmem:[%s5248_s8 + $0x190] sm:$0xff]  ;;  %v1641_v8 = vld [vmem:[%s5248_s8 + $0x1a0] sm:$0xff] }
 0x425   :  { %v1539_v21 = vadd.f32 %v1538_v16, %v1537_v29  ;;  %v1554_v40 = vadd.f32 %v1553_v19, %v1552_v4  ;;  %v1571_v44 = vrot.slane %v1570_v12, 2  ;;  %v1636_v29 = vld [vmem:[%s5248_s8 + $0x178] sm:$0xff]  ;;  %v1559_v33 = vmul.f32 %v4845_v23, %v4845_v23  ;;  %v2328_v15 = vld [vmem:[%s5251_s11 + $0x140] sm:$0xff]  ;;  %v2329_v20 = vld [vmem:[%s5251_s11 + $0x148] sm:$0xff] }
 0x426   :  { %v1533_v34 = vrot.slane %v1532_v9, 1  ;;  %v1565_v36 = vadd.f32 %v1564_v43, %v1563_v11  ;;  %v1585_v50 = vrot.slane %v1584_v41, 2  ;;  %v3187_v63 = vpack.c.bf16 %v1636_v29, %v1635_v28  ;;  %v2330_v28 = vld [vmem:[%s5251_s11 + $0x150] sm:$0xff]  ;;  %v2331_v29 = vld [vmem:[%s5251_s11 + $0x158] sm:$0xff] }
 0x427   :  { %v1540_v17 = vrot.slane %v1539_v21, 1  ;;  %v1555_v47 = vrot.slane %v1554_v40, 1  ;;  %v1572_v51 = vadd.f32 %v1571_v44, %v1570_v12  ;;  %v1542_v11 = vsel %vm237_vm4, %v4845_v23, 0.0 }
 0x428   :  { %v1534_v53 = vadd.f32 %v1533_v34, %v1532_v9  ;;  %v1566_v54 = vrot.slane %v1565_v36, 1  ;;  %v1586_v56 = vadd.f32 %v1585_v50, %v1584_v41  ;;  %v3190_v16 = vpack.c.bf16 %v1638_v0, %v1637_v35  ;;  %v1640_v9 = vld [vmem:[%s5248_s8 + $0x198] sm:$0xff]  ;;  %v2333_v35 = vld [vmem:[%s5251_s11 + $0x168] sm:$0xff] }
 0x429   :  { %v1541_v18 = vadd.f32 %v1540_v17, %v1539_v21  ;;  %v1556_v24 = vadd.f32 %v1555_v47, %v1554_v40  ;;  %v1573_v25 = vrot.slane %v1572_v51, 1  ;;  %v1543_v2 = vrot.slane %v1542_v11, 4  ;;  %v1642_v21 = vld [vmem:[%s5248_s8 + $0x1a8] sm:$0xff]  ;;  %v1644_v40 = vld [vmem:[%s5248_s8 + $0x1b8] sm:$0xff] }
 0x42a   :  { %v1587_v45 = vrot.slane %v1586_v56, 1  ;;  %v1567_v30 = vadd.f32 %v1566_v54, %v1565_v36  ;;  %v1575_v4 = vsel %vm237_vm4, %v1559_v33, 0.0  ;;  %v3193_v12 = vpack.c.bf16 %v1640_v9, %v1639_v6  ;;  %v1643_v36 = vld [vmem:[%s5248_s8 + $0x1b0] sm:$0xff]  ;;  %v1646_v47 = vld [vmem:[%s5248_s8 + $0x1c8] sm:$0xff]  ;;  %v2332_v33 = vld [vmem:[%s5251_s11 + $0x160] sm:$0xff] }
 0x42b   :  { %1715 = vmatprep.mubr.f32.mxu0 %v1541_v18  ;;  %v1574_v61 = vadd.f32 %v1573_v25, %v1572_v51  ;;  %v1576_v43 = vrot.slane %v1575_v4, 4  ;;  %v1544_v19 = vadd.f32 %v1543_v2, %v1542_v11  ;;  %v3196_v27 = vpack.c.bf16 %v1642_v21, %v1641_v8  ;;  %v1950_v25 = vld [vmem:[%s5247_s7 + $0x28] sm:$0xff]  ;;  %v2334_v11 = vld [vmem:[%s5251_s11 + $0x170] sm:$0xff] }
 0x42c   :  { %1716 = vmatmul.mubr.f32.vlgmr.msra.gmra.mrb[18].mxu0 %v1534_v53  ;;  %v1588_v31 = vadd.f32 %v1587_v45, %v1586_v56  ;;  %v3199_v17 = vpack.c.bf16 %v1644_v40, %v1643_v36  ;;  %v1948_v45 = vld [vmem:[%s5247_s7 + $0x18] sm:$0xff]  ;;  %v3342_v0 = vpack.c.bf16 %v2333_v35, %v2332_v33  ;;  %v2296_v35 = vld [vmem:[%s5251_s11 + $0x40] sm:$0xff] }
 0x42d   :  { %3167 = vmatpush1.bf16.msra.mxu0 %v3166_v46  ;;  %2526 = vmatprep.mubr.msk.f32.mxu0 %vm1647_vm9, %v1556_v24  ;;  %v1577_v26 = vadd.f32 %v1576_v43, %v1575_v4  ;;  %v1545_v34 = vrot.slane %v1544_v19, 2  ;;  %v1946_v24 = vld [vmem:[%s5247_s7 + $0x8] sm:$0xff] }
 0x42e   :  { %3168 = vmatprep.subr.bf16.mxu0 %v3399_v13  ;;  %1859 = vmatprep.mubr.f32.mxu1 %v1574_v61  ;;  %v4986_v60 = vpack.c.bf16 %v1950_v25, %v1946_v24  ;;  %v1949_v61 = vld [vmem:[%s5247_s7 + $0x20] sm:$0xff] }
 0x42f   :  { %1860 = vmatmul.mubr.f32.vlgmr.msra.gmra.mrb[6].mxu1 %v1567_v30  ;;  %v1578_v41 = vrot.slane %v1577_v26, 2  ;;  %v1546_v44 = vadd.f32 %v1545_v34, %v1544_v19  ;;  %v1952_v30 = vld [vmem:[%s5247_s7 + $0x38] sm:$0xff]  ;;  %v1942_v24 = vld [vmem:[%s5250_s10] sm:$0x1] }
 0x430   :  { %3238 = vmatpush1.bf16.msra.mxu1 %v3166_v46  ;;  %2527 = vmatprep.mubr.msk.f32.mxu1 %vm1647_vm9, %v1588_v31  ;;  %v1645_v46 = vld [vmem:[%s5248_s8 + $0x1c0] sm:$0xff]  ;;  %v4999_v31 = vpack.c.bf16 %v1952_v30, %v1948_v45  ;;  %v2289_v30 = vld [vmem:[%s5251_s11 + $0x8] sm:$0xff] }
 0x431   :  { %3170 = vmatpush1.bf16.msra.mxu0 %v3169_v32  ;;  %3239 = vmatprep.subr.bf16.mxu1 %v3399_v13  ;;  %v1579_v50 = vadd.f32 %v1578_v41, %v1577_v26  ;;  %v3202_v18 = vpack.c.bf16 %v1646_v47, %v1645_v46  ;;  %v1547_v51 = vrot.slane %v1546_v44, 1  ;;  %v1947_v47 = vld [vmem:[%s5247_s7 + $0x10] sm:$0xff]  ;;  %v2304_v25 = vld [vmem:[%s5251_s11 + $0x80] sm:$0xff] }
 0x432   :  { %3171 = vmatprep.subr.bf16.mxu0 %v3399_v13  ;;  %v2288_v45 = vld [vmem:[%s5251_s11] sm:$0xff] }
 0x433   :  { %v1580_v53 = vrot.slane %v1579_v50, 1  ;;  %v1548_v54 = vadd.f32 %v1547_v51, %v1546_v44 }
 0x434   :  { %3241 = vmatpush1.bf16.msra.mxu1 %v3169_v32  ;;  %v4997_v32 = vpack.c.bf16 %v1949_v61, %v1945_v57  ;;  %v2305_v57 = vld [vmem:[%s5251_s11 + $0x88] sm:$0xff] }
 0x435   :  { %3173 = vmatpush1.bf16.msra.mxu0 %v3172_v37  ;;  %3242 = vmatprep.subr.bf16.mxu1 %v3399_v13  ;;  %v1581_v56 = vadd.f32 %v1580_v53, %v1579_v50  ;;  %v1951_v50 = vld [vmem:[%s5247_s7 + $0x30] sm:$0xff] }
 0x436   :  { %3174 = vmatprep.subr.bf16.mxu0 %v3399_v13  ;;  %v3281_v53 = vpack.c.bf16 %v1951_v50, %v1947_v47  ;;  %v2341_v47 = vld [vmem:[%s5251_s11 + $0x1a8] sm:$0xff] }
 0x438   :  { %3244 = vmatpush1.bf16.msra.mxu1 %v3172_v37  ;;  %v2322_v37 = vld [vmem:[%s5251_s11 + $0x110] sm:$0xff] }
 0x439   :  { %3176 = vmatpush1.bf16.msra.mxu0 %v3175_v58  ;;  %3245 = vmatprep.subr.bf16.mxu1 %v3399_v13 }
 0x43a   :  { %3177 = vmatprep.subr.bf16.mxu0 %v3399_v13 }
 0x43c   :  { %3247 = vmatpush1.bf16.msra.mxu1 %v3175_v58  ;;  %v3327_v58 = vpack.c.bf16 %v2323_v49, %v2322_v37  ;;  %v2290_v37 = vld [vmem:[%s5251_s11 + $0x10] sm:$0xff]  ;;  %v2308_v49 = vld [vmem:[%s5251_s11 + $0xa0] sm:$0xff] }
 0x43d   :  { %3179 = vmatpush1.bf16.msra.mxu0 %v3178_v62  ;;  %3248 = vmatprep.subr.bf16.mxu1 %v3399_v13 }
 0x43e   :  { %3180 = vmatprep.subr.bf16.mxu0 %v3399_v13 }
 0x440   :  { %3250 = vmatpush1.bf16.msra.mxu1 %v3178_v62  ;;  %v3330_v62 = vpack.c.bf16 %v2325_v42, %v2324_v38  ;;  %v2292_v42 = vld [vmem:[%s5251_s11 + $0x20] sm:$0xff] }
 0x441   :  { %3182 = vmatpush1.bf16.msra.mxu0 %v3181_v10  ;;  %3251 = vmatprep.subr.bf16.mxu1 %v3399_v13 }
 0x442   :  { %3183 = vmatprep.subr.bf16.mxu0 %v3399_v13 }
 0x444   :  { %3253 = vmatpush1.bf16.msra.mxu1 %v3181_v10  ;;  %v3333_v10 = vpack.c.bf16 %v2327_v5, %v2326_v1  ;;  %v2310_v1 = vld [vmem:[%s5251_s11 + $0xb0] sm:$0xff]  ;;  %v2311_v5 = vld [vmem:[%s5251_s11 + $0xb8] sm:$0xff] }
 0x445   :  { %3185 = vmatpush1.bf16.msra.mxu0 %v3184_v22  ;;  %3254 = vmatprep.subr.bf16.mxu1 %v3399_v13 }
 0x446   :  { %3186 = vmatprep.subr.bf16.mxu0 %v3399_v13 }
 0x448   :  { %3256 = vmatpush1.bf16.msra.mxu1 %v3184_v22  ;;  %v3336_v22 = vpack.c.bf16 %v2329_v20, %v2328_v15  ;;  %v3303_v15 = vpack.c.bf16 %v2311_v5, %v2310_v1  ;;  %v2294_v20 = vld [vmem:[%s5251_s11 + $0x30] sm:$0xff] }
 0x449   :  { %3188 = vmatpush1.bf16.msra.mxu0 %v3187_v63  ;;  %3257 = vmatprep.subr.bf16.mxu1 %v3399_v13 }
 0x44a   :  { %3189 = vmatprep.subr.bf16.mxu0 %v3399_v13 }
 0x44c   :  { %3259 = vmatpush1.bf16.msra.mxu1 %v3187_v63  ;;  %v3339_v63 = vpack.c.bf16 %v2331_v29, %v2330_v28  ;;  %v2312_v29 = vld [vmem:[%s5251_s11 + $0xc0] sm:$0xff] }
 0x44d   :  { %3191 = vmatpush1.bf16.msra.mxu0 %v3190_v16  ;;  %3260 = vmatprep.subr.bf16.mxu1 %v3399_v13 }
 0x44e   :  { %3192 = vmatprep.subr.bf16.mxu0 %v3399_v13 }
 0x450   :  { %3262 = vmatpush1.bf16.msra.mxu1 %v3190_v16  ;;  %v2335_v16 = vld [vmem:[%s5251_s11 + $0x178] sm:$0xff] }
 0x451   :  { %3194 = vmatpush1.bf16.msra.mxu0 %v3193_v12  ;;  %3263 = vmatprep.subr.bf16.mxu1 %v3399_v13  ;;  %v3345_v2 = vpack.c.bf16 %v2335_v16, %v2334_v11  ;;  %v2336_v11 = vld [vmem:[%s5251_s11 + $0x180] sm:$0xff] }
 0x452   :  { %3195 = vmatprep.subr.bf16.mxu0 %v3399_v13 }
 0x454   :  { %3265 = vmatpush1.bf16.msra.mxu1 %v3193_v12 }
 0x455   :  { %3197 = vmatpush1.bf16.msra.mxu0 %v3196_v27  ;;  %3266 = vmatprep.subr.bf16.mxu1 %v3399_v13 }
 0x456   :  { %3198 = vmatprep.subr.bf16.mxu0 %v3399_v13 }
 0x458   :  { %3268 = vmatpush1.bf16.msra.mxu1 %v3196_v27 }
 0x459   :  { %3200 = vmatpush1.bf16.msra.mxu0 %v3199_v17  ;;  %3269 = vmatprep.subr.bf16.mxu1 %v3399_v13 }
 0x45a   :  { %3201 = vmatprep.subr.bf16.mxu0 %v3399_v13 }
 0x45c   :  { %3271 = vmatpush1.bf16.msra.mxu1 %v3199_v17 }
 0x45d   :  { %3203 = vmatpush1.bf16.msra.mxu0 %v3202_v18  ;;  %3272 = vmatprep.subr.bf16.mxu1 %v3399_v13 }
 0x45e   :  { %3276 = vmatprep.subr.bf16.mxu0 %v4986_v60 }
 0x460   :  { %3274 = vmatpush1.bf16.msra.mxu1 %v3202_v18  ;;  %1786 = vmatmul.mubr.f32.vlgmr.msra.gmra.mrb[20].mxu0 %v1548_v54  ;;  %v1938_v18 = vld [vmem:[%s5249_s9] sm:$0x1]  ;;  %s2504_s9 = sshll.u32 %s3401_s18, 4  ;;  %s2505_s9 = int_to_ptr.vmem [resolvable:$true] %s2504_s9 }
 0x461   :  { %2021 = vmatprep.mubr.f32.mxu0 %v3398_v7  ;;  %3323 = vmatprep.subr.bf16.mxu1 %v3399_v13  ;;  %s3374_s19 = scalar_lea.vmem %s2505_s9, 32  ;;  %p3379_p1 = scmp.lt.s32.totalorder %s2505_s9, %s2505_s9 }
 0x462   :  { %3278 = vmatpush1.bf16.msra.mxu0 %v4997_v32  ;;  %p3375_p0 = scmp.ne.s32.totalorder %s2505_s9, %s3374_s19  ;;  %p3380_p2 = scmp.lt.s32.totalorder %s3374_s19, %s3374_s19 }
 0x463   :  { %1930 = vmatmul.mubr.f32.vlgmr.msra.gmra.mrb[8].mxu1 %v1581_v56  ;;  %3280 = vmatprep.subr.bf16.mxu0 %v4999_v31 }
 0x464   :  { %3325 = vmatpush1.bf16.msra.mxu1 %v3324_v39  ;;  %v2291_v39 = vld [vmem:[%s5251_s11 + $0x18] sm:$0xff]  ;;  %p3381_p3 = por %p3380_p2, %p3379_p1 }
 0x465   :  { %3326 = vmatprep.subr.bf16.mxu1 %v3399_v13 }
 0x466   :  { %p3382_p4 = pnand %p3381_p3, %p3375_p0 }
 0x468   :  { %3328 = vmatpush1.bf16.msra.mxu1 %v3327_v58  ;;  %v2309_v58 = vld [vmem:[%s5251_s11 + $0xa8] sm:$0xff] }
 0x469   :  { %3329 = vmatprep.subr.bf16.mxu1 %v3399_v13  ;;  %v3299_v38 = vpack.c.bf16 %v2309_v58, %v2308_v49 }
 0x46c   :  { %3331 = vmatpush1.bf16.msra.mxu1 %v3330_v62  ;;  %v2293_v62 = vld [vmem:[%s5251_s11 + $0x28] sm:$0xff] }
 0x46d   :  { %3332 = vmatprep.subr.bf16.mxu1 %v3399_v13 }
 0x470   :  { %3334 = vmatpush1.bf16.msra.mxu1 %v3333_v10  ;;  %v3301_v10 = vpack.c.bf16 %v2293_v62, %v2292_v42 }
 0x471   :  { %3335 = vmatprep.subr.bf16.mxu1 %v3399_v13 }
 0x474   :  { %3337 = vmatpush1.bf16.msra.mxu1 %v3336_v22  ;;  %v2295_v22 = vld [vmem:[%s5251_s11 + $0x38] sm:$0xff] }
 0x475   :  { %3338 = vmatprep.subr.bf16.mxu1 %v3399_v13  ;;  %v3305_v28 = vpack.c.bf16 %v2295_v22, %v2294_v20 }
 0x478   :  { %3340 = vmatpush1.bf16.msra.mxu1 %v3339_v63  ;;  %v2313_v63 = vld [vmem:[%s5251_s11 + $0xc8] sm:$0xff] }
 0x479   :  { %3341 = vmatprep.subr.bf16.mxu1 %v3399_v13  ;;  %v3307_v33 = vpack.c.bf16 %v2313_v63, %v2312_v29 }
 0x47c   :  { %3343 = vmatpush1.bf16.msra.mxu1 %v3342_v0  ;;  %v2297_v0 = vld [vmem:[%s5251_s11 + $0x48] sm:$0xff] }
 0x47d   :  { %3344 = vmatprep.subr.bf16.mxu1 %v3399_v13  ;;  %v3309_v16 = vpack.c.bf16 %v2297_v0, %v2296_v35 }
 0x480   :  { %3346 = vmatpush1.bf16.msra.mxu1 %v3345_v2  ;;  %v2337_v2 = vld [vmem:[%s5251_s11 + $0x188] sm:$0xff] }
 0x481   :  { %3347 = vmatprep.subr.bf16.mxu1 %v3399_v13 }
 0x4ff   :  { %v2636_v4 = vpop.f32.mrb[18].mxu0 }
 0x500   :  { %v2637_v6 = vpop.f32.mrb[19].mxu0 }
 0x501   :  { %v2638_v9 = vadd.f32 %v2637_v6, %v2636_v4  ;;  %v3348_v4 = vpack.c.bf16 %v2337_v2, %v2336_v11  ;;  %v2314_v6 = vld [vmem:[%s5251_s11 + $0xd0] sm:$0xff] }
 0x502   :  { %v2671_v43 = vpop.f32.mrb[6].mxu1 }
 0x503   :  { %v2672_v12 = vpop.f32.mrb[7].mxu1  ;;  %3349 = vmatpush1.bf16.msra.mxu1 %v3348_v4 }
 0x504   :  { %v2673_v19 = vadd.f32 %v2672_v12, %v2671_v43  ;;  %v2298_v12 = vld [vmem:[%s5251_s11 + $0x50] sm:$0xff]  ;;  %3350 = vmatprep.subr.bf16.mxu1 %v3399_v13 }
 0x533   :  { %v1787_v8 = vpop.f32.mrb[20].mxu0 }
 0x534   :  { %v1788_v21 = vadd.f32 %v2638_v9, %v1787_v8  ;;  %v1789_v26 = vpop.f32.mrb[21].mxu0  ;;  %v2315_v9 = vld [vmem:[%s5251_s11 + $0xd8] sm:$0xff]  ;;  %v2338_v8 = vld [vmem:[%s5251_s11 + $0x190] sm:$0xff] }
 0x535   :  { %v3311_v43 = vpack.c.bf16 %v2315_v9, %v2314_v6  ;;  %v2339_v26 = vld [vmem:[%s5251_s11 + $0x198] sm:$0xff] }
 0x536   :  { %v1791_v27 = vmul.f32 0.01724138, %v1788_v21  ;;  %v1931_v34 = vpop.f32.mrb[8].mxu1 }
 0x537   :  { %v1932_v36 = vadd.f32 %v2673_v19, %v1931_v34  ;;  %v1933_v40 = vpop.f32.mrb[9].mxu1  ;;  %v2299_v19 = vld [vmem:[%s5251_s11 + $0x58] sm:$0xff]  ;;  %v2316_v34 = vld [vmem:[%s5251_s11 + $0xe0] sm:$0xff] }
 0x538   :  { %v1936_v41 = vmul.f32 %v1791_v27, %v1791_v27  ;;  %v3313_v21 = vpack.c.bf16 %v2299_v19, %v2298_v12 }
 0x539   :  { %v1935_v17 = vmul.f32 0.01724138, %v1932_v36  ;;  %v2317_v36 = vld [vmem:[%s5251_s11 + $0xe8] sm:$0xff] }
 0x53a   :  { %v3315_v40 = vpack.c.bf16 %v2317_v36, %v2316_v34 }
 0x53b   :  { %v1937_v44 = vsub.f32 %v1935_v17, %v1936_v41  ;;  %v2300_v41 = vld [vmem:[%s5251_s11 + $0x60] sm:$0xff]  ;;  %v2301_v17 = vld [vmem:[%s5251_s11 + $0x68] sm:$0xff] }
 0x53d   :  { %v1939_v46 = vadd.f32 1e-05, %v1937_v44  ;;  %v2340_v44 = vld [vmem:[%s5251_s11 + $0x1a0] sm:$0xff] }
 0x53e   :  { %v3354_v50 = vpack.c.bf16 %v2341_v47, %v2340_v44 }
 0x53f   :  { %3372 = vrsqrt.f32 %v1939_v46  ;;  %v3317_v46 = vpack.c.bf16 %v2301_v17, %v2300_v41 }
 0x549   :  { %v3373_v51 = vpop.eup %3372 }
 0x54a   :  { %v1941_v54 = vmul.f32 %v3373_v51, %v1938_v18  ;;  %v2318_v18 = vld [vmem:[%s5251_s11 + $0xf0] sm:$0xff]  ;;  %v2319_v51 = vld [vmem:[%s5251_s11 + $0xf8] sm:$0xff] }
 0x54c   :  { %2528 = vmatmul.mubr.msk.f32.vlgmr.msra.gmra.mrb[22].mxu0 %vm1953_vm10, %v1941_v54  ;;  %v1943_v56 = vmul.f32 %v1941_v54, %v1791_v27  ;;  %v3351_v27 = vpack.c.bf16 %v2339_v26, %v2338_v8 }
 0x54d   :  { %3282 = vmatpush1.bf16.msra.mxu0 %v3281_v53  ;;  %2092 = vmatprep.mubr.f32.mxu0 %v3398_v7 }
 0x54e   :  { %3284 = vmatprep.subr.bf16.mxu0 %v4986_v60  ;;  %v1944_v61 = vsub.f32 %v1942_v24, %v1943_v56  ;;  %v3291_v60 = vpack.c.bf16 %v2305_v57, %v2304_v25  ;;  %3352 = vmatpush1.bf16.msra.mxu1 %v3351_v27  ;;  %v2303_v56 = vld [vmem:[%s5251_s11 + $0x78] sm:$0xff]  ;;  %v2342_v24 = vld [vmem:[%s5251_s11 + $0x1b0] sm:$0xff] }
 0x54f   :  { %3353 = vmatprep.subr.bf16.mxu1 %v3399_v13  ;;  %v2343_v57 = vld [vmem:[%s5251_s11 + $0x1b8] sm:$0xff] }
 0x550   :  { %2529 = vmatmul.mubr.msk.f32.vlgmr.msra.gmra.mrb[24].mxu0 %vm1953_vm10, %v1941_v54  ;;  %v2302_v54 = vld [vmem:[%s5251_s11 + $0x70] sm:$0xff] }
 0x551   :  { %3286 = vmatpush1.bf16.msra.mxu0 %v4997_v32  ;;  %2166 = vmatprep.mubr.f32.mxu0 %v3398_v7  ;;  %v2307_v32 = vld [vmem:[%s5251_s11 + $0x98] sm:$0xff]  ;;  %v3321_v25 = vpack.c.bf16 %v2303_v56, %v2302_v54 }
 0x552   :  { %3288 = vmatprep.subr.bf16.mxu0 %v4999_v31  ;;  %v3293_v31 = vpack.c.bf16 %v2289_v30, %v2288_v45  ;;  %v3295_v52 = vpack.c.bf16 %v2307_v32, %v2306_v48  ;;  %3355 = vmatpush1.bf16.msra.mxu1 %v3354_v50  ;;  %v2345_v45 = vld [vmem:[%s5251_s11 + $0x1c8] sm:$0xff] }
 0x553   :  { %3356 = vmatprep.subr.bf16.mxu1 %v3399_v13 }
 0x554   :  { %2530 = vmatmul.mubr.msk.f32.vlgmr.msra.gmra.mrb[26].mxu0 %vm1953_vm10, %v1944_v61 }
 0x555   :  { %3290 = vmatpush1.bf16.msra.mxu0 %v3281_v53  ;;  %2237 = vmatprep.mubr.f32.mxu0 %v3398_v7  ;;  %v3297_v7 = vpack.c.bf16 %v2291_v39, %v2290_v37  ;;  %v3319_v53 = vpack.c.bf16 %v2319_v51, %v2318_v18 }
 0x556   :  { %3292 = vmatprep.subr.bf16.mxu0 %v3291_v60  ;;  %v2344_v60 = vld [vmem:[%s5251_s11 + $0x1c0] sm:$0xff] }
 0x557   :  { %v3360_v30 = vpack.c.bf16 %v2345_v45, %v2344_v60 }
 0x558   :  { %2531 = vmatmul.mubr.msk.f32.vlgmr.msra.gmra.mrb[28].mxu0 %vm1953_vm10, %v1944_v61  ;;  %v3357_v61 = vpack.c.bf16 %v2343_v57, %v2342_v24 }
 0x559   :  { %3294 = vmatpush3.bf16.msra.mxu0 %v3293_v31 }
 0x55a   :  { %3296 = vmatprep.subr.bf16.mxu0 %v3295_v52  ;;  %3358 = vmatpush1.bf16.msra.mxu1 %v3357_v61 }
 0x55b   :  { %3359 = vmatprep.subr.bf16.mxu1 %v3399_v13 }
 0x55d   :  { %3298 = vmatpush3.bf16.msra.mxu0 %v3297_v7 }
 0x55e   :  { %3300 = vmatprep.subr.bf16.mxu0 %v3299_v38  ;;  %3361 = vmatpush1.bf16.msra.mxu1 %v3360_v30 }
 0x561   :  { %3302 = vmatpush3.bf16.msra.mxu0 %v3301_v10 }
 0x562   :  { %3304 = vmatprep.subr.bf16.mxu0 %v3303_v15 }
 0x565   :  { %3306 = vmatpush3.bf16.msra.mxu0 %v3305_v28 }
 0x566   :  { %3308 = vmatprep.subr.bf16.mxu0 %v3307_v33 }
 0x569   :  { %3310 = vmatpush3.bf16.msra.mxu0 %v3309_v16  ;;  %v2532_v16 = vld [vmem:[%s5252_s12] ss:$0 sm:$0xff] }
 0x56a   :  { %3312 = vmatprep.subr.bf16.mxu0 %v3311_v43 }
 0x56d   :  { %3314 = vmatpush3.bf16.msra.mxu0 %v3313_v21 }
 0x56e   :  { %3316 = vmatprep.subr.bf16.mxu0 %v3315_v40 }
 0x571   :  { %3318 = vmatpush3.bf16.msra.mxu0 %v3317_v46 }
 0x572   :  { %3320 = vmatprep.subr.bf16.mxu0 %v3319_v53 }
 0x575   :  { %3322 = vmatpush3.bf16.msra.mxu0 %v3321_v25 }
 0x61f   :  { %v2023_v48 = vpop.f32.mrb[22].mxu0 }
 0x620   :  { %v2247_v32 = vrot.slane %v2023_v48, %v4390_v3  ;;  %v2025_v31 = vpop.f32.mrb[23].mxu0 }
 0x621   :  { %v2251_v52 = vrot.slane %v2025_v31, %v4390_v3 }
 0x622   :  { %v2260_v37 = vmul.f32 %v2247_v32, %v4843_v14 }
 0x623   :  { %v2261_v39 = vmul.f32 %v2251_v52, %v4851_v55  ;;  %v2094_v49 = vpop.f32.mrb[24].mxu0 }
 0x624   :  { %v2255_v58 = vrot.slane %v2094_v49, %v4390_v3  ;;  %v2096_v7 = vpop.f32.mrb[25].mxu0 }
 0x625   :  { %v2259_v38 = vrot.slane %v2096_v7, %v4390_v3 }
 0x626   :  { %v2262_v13 = vmul.f32 %v2255_v58, %v4845_v23 }
 0x627   :  { %v2263_v42 = vmul.f32 %v2259_v38, %v4853_v59  ;;  %v2168_v62 = vpop.f32.mrb[26].mxu0 }
 0x628   :  { %v2267_v1 = vrot.slane %v2168_v62, %v4390_v3  ;;  %v2170_v5 = vpop.f32.mrb[27].mxu0 }
 0x629   :  { %v2271_v10 = vrot.slane %v2170_v5, %v4390_v3 }
 0x62a   :  { %v2280_v15 = vadd.f32 %v2267_v1, %v2260_v37 }
 0x62b   :  { %v2281_v14 = vadd.f32 %v2271_v10, %v2261_v39  ;;  %v2239_v20 = vpop.f32.mrb[28].mxu0 }
 0x62c   :  { %v2275_v55 = vrot.slane %v2239_v20, %v4390_v3  ;;  %v2241_v22 = vpop.f32.mrb[29].mxu0  ;;  %v2284_v63 = vmax.f32 %v2280_v15, 0.0 }
 0x62d   :  { %v2285_v28 = vmax.f32 %v2281_v14, 0.0  ;;  %v2279_v29 = vrot.slane %v2241_v22, %v4390_v3 }
 0x62e   :  { %v2282_v33 = vadd.f32 %v2275_v55, %v2262_v13 }
 0x62f   :  { %v2283_v23 = vadd.f32 %v2279_v29, %v2263_v42  ;;  %2420 = vmatprep.mubr.f32.mxu0 %v2285_v28 }
 0x630   :  { %2421 = vmatmul.mubr.f32.vlgmr.msra.gmra.mrb[30].mxu0 %v2284_v63  ;;  %v2286_v35 = vmax.f32 %v2282_v33, 0.0 }
 0x631   :  { %v2287_v59 = vmax.f32 %v2283_v23, 0.0 }
 0x633   :  { %2533 = vmatprep.mubr.msk.f32.mxu1 %vm1647_vm9, %v2287_v59 }
 0x634   :  { %2491 = vmatmul.mubr.f32.vlgmr.msra.gmra.mrb[10].mxu1 %v2286_v35 }
 0x703   :  { %v2706_v0 = vpop.f32.mrb[30].mxu0 }
 0x704   :  { %v2707_v11 = vpop.f32.mrb[31].mxu0 }
 0x705   :  { %v2708_v2 = vadd.f32 %v2707_v11, %v2706_v0 }
 0x707   :  { %v2423_v3 = vadd.f32 %v2708_v2, %v2532_v16  ;;  %v2492_v4 = vpop.f32.mrb[10].mxu1 }
 0x708   :  { %v2494_v6 = vpop.f32.mrb[11].mxu1 }
 0x709   :  { %v2493_v9 = vadd.f32 %v2492_v4, %v2423_v3 }
 0x70b   :  { %2497 = vst.msk [vmem:[#allocation2] sm:$0x3] %vm2496_vm11, %v2493_v9 }
 0x70c   :  { %3385 = shalt.err (!%p3382_p4)
}
 0x70d   :  { %s3386_s12 = scalar_lea.hbm %s5253_s13, 32 }
 0x70e   :  { %p3387_p5 = scmp.ne.s32.totalorder %s5253_s13, %s3386_s12  ;;  %p3390_p6 = scmp.lt.u32.totalorder %s3386_s12, %s5253_s13 }
 0x710   :  { %p3392_p7 = pnand %p3390_p6, %p3387_p5 }
 0x712   :  { %3395 = shalt.err (!%p3392_p7)
}
 0x713   :  { %2507 = dma.vmem_to_hbm [thread:$0]  %s2505_s9, 32, %s5253_s13, [#allocation3]  }
 0x714   :  { %3396 = dma.done.wait [#allocation3], 32  }
 0x715   :  { %3397 = vsyncadd [#allocation3], 4294967264 }
 0x716   :  { %2511 = vsyncpa [#allocation3], 1 }

</bundles_post_ra>
